<compile_context>
chip_gen: v7x
topology: tpu7x:2x2x1
jax: 0.10.0
libtpu: 0.0.40
codegen_flags: <defaults>
</compile_context>

<pallas_src>
import functools

import jax
import jax.numpy as jnp
from jax import lax
from jax.experimental import pallas as pl
from jax.experimental.pallas import tpu as pltpu

_POOL_K = 31
_POOL_PAD = 15
_LANES = 128
_VMEM_BUDGET = 40 << 20   # per-step working-set budget (fits v7x's 64 MiB VMEM)


def _round_up(x: int, m: int) -> int:
    return ((x + m - 1) // m) * m


def _band(n: int, pad: int) -> jax.Array:
    """(n, n) 0/1 band matrix with |i - j| <= pad, in bf16 (exact)."""
    idx = jnp.arange(n, dtype=jnp.int32)
    return (jnp.abs(idx[:, None] - idx[None, :]) <= pad).astype(jnp.bfloat16)


def _blockdiag_band(n_blocks: int, hp: int, pad: int) -> jax.Array:
    """(n_blocks*hp, n_blocks*hp) block-diagonal band matrix, bf16."""
    r = n_blocks * hp
    idx = jnp.arange(r, dtype=jnp.int32)
    same_img = (idx[:, None] // hp) == (idx[None, :] // hp)
    near = jnp.abs(idx[:, None] - idx[None, :]) <= pad
    return (same_img & near).astype(jnp.bfloat16)


def _fast_recip(x):
    """approx EUP reciprocal + one Newton step (~f32 accuracy, no full divide)."""
    r = pl.reciprocal(x, approx=True)
    return r * (2.0 - x * r)


def _bce_iou_kernel(pred_ref, mask_ref, bw_ref, bh_ref, out_ref, *,
                    true_h, true_w, blockdiag):
    B, Hp, Wp = pred_ref.shape
    R = B * Hp
    inv_k2 = 1.0 / float(_POOL_K * _POOL_K)   # count_include_pad=True => /961

    pred = pred_ref[...].astype(jnp.float32)    # (B, Hp, Wp)
    mask_bf = mask_ref[...]                     # (B, Hp, Wp) bf16 (0/1 exact)
    mask = mask_bf.astype(jnp.float32)

    # ---- separable 31x31 zero-padded box sum on the MXU --------------------
    # W direction: ONE (B*Hp, Wp) x (Wp, Wp) matmul for the whole block.
    mask2 = mask_bf.reshape(R, Wp)
    t2 = jnp.dot(mask2, bw_ref[...], preferred_element_type=jnp.float32)
    t2 = t2.astype(jnp.bfloat16)    # integer partial sums <= 31 -> exact in bf16
    if blockdiag:
        # H direction folded into one (R, R) block-diagonal band matmul.
        box = jnp.dot(bh_ref[...], t2,
                      preferred_element_type=jnp.float32).reshape(B, Hp, Wp)
    else:
        # Large Hp: per-image (Hp, Hp) x (Hp, Wp) matmuls, statically unrolled.
        t3 = t2.reshape(B, Hp, Wp)
        bh = bh_ref[...]
        box = jnp.stack(
            [jnp.dot(bh, t3[b], preferred_element_type=jnp.float32)
             for b in range(B)], axis=0)
    avg = box * inv_k2

    weight = 1.0 + 5.0 * jnp.abs(avg - mask)

    # Zero the weight of padded rows/columns so they drop out of the sums.
    vmask = None
    if true_w != Wp:
        vmask = lax.broadcasted_iota(jnp.int32, (B, Hp, Wp), 2) < true_w
    if true_h != Hp:
        rm = lax.broadcasted_iota(jnp.int32, (B, Hp, Wp), 1) < true_h
        vmask = rm if vmask is None else (vmask & rm)
    if vmask is not None:
        weight = weight * vmask.astype(jnp.float32)

    # ---- elementwise losses (one shared exp feeds BCE and sigmoid) ---------
    e = jnp.exp(-jnp.abs(pred))
    # binary_cross_entropy_with_logits, reduction='none' (stable form).
    bce = jnp.maximum(pred, 0.0) - pred * mask + jnp.log1p(e)

    sig = jnp.where(pred >= 0.0, 1.0, e) * _fast_recip(1.0 + e)  # sigmoid(pred)
    inter = sig * mask
    iou = 1.0 - (inter + 1.0) * _fast_recip(sig + mask - inter + 1.0)

    # ---- fused weighted per-image reductions: sum(w*(bce+iou)) / sum(w) ----
    wval = weight * (bce + iou)
    num = jnp.sum(jnp.sum(wval, axis=2), axis=1)     # (B,)
    den = jnp.sum(jnp.sum(weight, axis=2), axis=1)   # (B,)
    per = (num / den).reshape(B, 1)                  # B full-precision divides

    # One unmasked, lane-dense (B, 128) store per grid step.
    out_ref[...] = jnp.broadcast_to(per, (B, _LANES)).astype(jnp.float32)


def bce_iou_loss(pred, mask):
    N, C, H, W = pred.shape
    nc = N * C

    Hp = _round_up(H, 8)
    Wp = _round_up(W, _LANES)

    # Small images: fold the H-pool into one block-diagonal matmul (full MXU
    # rows). Large images: per-image H matmuls already fill the MXU.
    blockdiag = Hp <= 64

    # B images per grid step: multiple of 8 (sublane-aligned output block),
    # targeting ~256 MXU rows per step, shrunk to fit the VMEM budget.
    B = max(8, ((256 // Hp) // 8) * 8) if blockdiag else 8

    def _est(b):
        r = b * Hp
        band_bytes = (r * r if blockdiag else Hp * Hp) * 2 + Wp * Wp * 2
        inputs = 2 * b * Hp * Wp * (4 + 2)        # double-buffered f32 + bf16
        temps = 8 * b * Hp * Wp * 4               # live f32 temporaries (worst case)
        return inputs + 2 * band_bytes + temps + 2 * b * _LANES * 4

    while B > 8 and _est(B) > _VMEM_BUDGET:
        B -= 8
    # Keep >= 2 grid steps when possible so both v7x TensorCores get work.
    while B > 8 and -(-nc // B) < 2:
        B -= 8

    nc_pad = _round_up(nc, B)

    pred_nc = pred.reshape(nc, H, W)
    # bf16 mask halves its HBM->VMEM bytes; exact for binary 0/1 masks.
    # TODO(synk): soft (non-binary) masks pick up bf16 rounding in avg/weight.
    mask_nc = mask.reshape(nc, H, W).astype(jnp.bfloat16)
    if nc_pad != nc or Hp != H or Wp != W:
        cfg = ((0, nc_pad - nc), (0, Hp - H), (0, Wp - W))
        pred_nc = jnp.pad(pred_nc, cfg)
        mask_nc = jnp.pad(mask_nc, cfg)

    bw = _band(Wp, _POOL_PAD)
    bh = _blockdiag_band(B, Hp, _POOL_PAD) if blockdiag else _band(Hp, _POOL_PAD)

    kernel = functools.partial(_bce_iou_kernel, true_h=H, true_w=W,
                               blockdiag=blockdiag)
    est = _est(B)
    vmem_limit = int(min(48 << 20, max(32 << 20, est + est // 4)))

    per_img = pl.pallas_call(
        kernel,
        out_shape=jax.ShapeDtypeStruct((nc_pad, _LANES), jnp.float32),
        grid_spec=pltpu.PrefetchScalarGridSpec(
            num_scalar_prefetch=0,
            grid=(nc_pad // B,),
            in_specs=[
                pl.BlockSpec((B, Hp, Wp), lambda i: (i, 0, 0)),
                pl.BlockSpec((B, Hp, Wp), lambda i: (i, 0, 0)),
                # Constant block index => VMEM-resident across the grid loop.
                pl.BlockSpec(bw.shape, lambda i: (0, 0)),
                pl.BlockSpec(bh.shape, lambda i: (0, 0)),
            ],
            out_specs=pl.BlockSpec((B, _LANES), lambda i: (i, 0)),
        ),
        compiler_params=pltpu.CompilerParams(
            dimension_semantics=("parallel",),
            vmem_limit_bytes=vmem_limit,
        ),
    )(pred_nc, mask_nc, bw, bh)

    # Final mean over the N*C per-image scalars: trivial glue in plain JAX.
    return jnp.mean(per_img[:nc, 0])


def bce_iou_loss_ref(pred, mask):
    """Pure-JAX reference mirroring the PyTorch module (validation only)."""
    k, p = _POOL_K, _POOL_PAD
    box = lax.reduce_window(
        mask, 0.0, lax.add,
        window_dimensions=(1, 1, k, k),
        window_strides=(1, 1, 1, 1),
        padding=((0, 0), (0, 0), (p, p), (p, p)),
    )
    avg = box / float(k * k)
    weight = 1.0 + 5.0 * jnp.abs(avg - mask)
    bce = jnp.maximum(pred, 0.0) - pred * mask + jnp.log1p(jnp.exp(-jnp.abs(pred)))
    sig = jax.nn.sigmoid(pred)
    inter = sig * mask
    union = sig + mask
    iou = 1.0 - (inter + 1.0) / (union - inter + 1.0)
    wbce = (weight * bce).sum(axis=(2, 3)) / weight.sum(axis=(2, 3))
    wiou = (weight * iou).sum(axis=(2, 3)) / weight.sum(axis=(2, 3))
    return (wbce + wiou).mean()


if __name__ == "__main__":
    key = jax.random.PRNGKey(0)
    k_pred, k_mask = jax.random.split(key)

    N, C, H, W = 2, 4, 16, 16
    pred = jax.random.normal(k_pred, (N, C, H, W), dtype=jnp.float32)
    mask = (jax.random.uniform(k_mask, (N, C, H, W)) > 0.5).astype(jnp.float32)

    out = jax.block_until_ready(bce_iou_loss(pred, mask))
    ref = jax.block_until_ready(bce_iou_loss_ref(pred, mask))

    assert jnp.allclose(out, ref, rtol=1e-4, atol=1e-5), (out, ref)
    print("KERNEL_OK")
</pallas_src>

<mosaic_0001>
module attributes {stable_mosaic.version = 11 : i64} {
  func.func @_bce_iou_kernel(%arg0: i32, %arg1: memref<8x16x128xf32, #tpu.memory_space<vmem>>, %arg2: memref<8x16x128xbf16, #tpu.memory_space<vmem>>, %arg3: memref<128x128xbf16, #tpu.memory_space<vmem>>, %arg4: memref<128x128xbf16, #tpu.memory_space<vmem>>, %arg5: memref<8x128xf32, #tpu.memory_space<vmem>>) attributes {dimension_semantics = [#tpu.dimension_semantics<parallel>], iteration_bounds = array<i64: 1>, scalar_prefetch = 0 : i64, scratch_operands = 0 : i64, tpu.core_type = #tpu.core_type<tc>, window_params = [{transform_indices = @transform_0, window_bounds = array<i64: 8, 16, 128>}, {transform_indices = @transform_1, window_bounds = array<i64: 8, 16, 128>}, {pipeline_mode = #tpu.pipeline_mode<synchronous>, transform_indices = @transform_2, window_bounds = array<i64: 128, 128>}, {pipeline_mode = #tpu.pipeline_mode<synchronous>, transform_indices = @transform_3, window_bounds = array<i64: 128, 128>}, {transform_indices = @transform_4, window_bounds = array<i64: 8, 128>}]} {
    %c0 = arith.constant 0 : index
    %c0_0 = arith.constant 0 : index
    %c0_1 = arith.constant 0 : index
    %0 = vector.load %arg1[%c0, %c0_0, %c0_1] : memref<8x16x128xf32, #tpu.memory_space<vmem>>, vector<8x16x128xf32>
    %c0_2 = arith.constant 0 : index
    %c0_3 = arith.constant 0 : index
    %c0_4 = arith.constant 0 : index
    %1 = vector.load %arg2[%c0_2, %c0_3, %c0_4] : memref<8x16x128xbf16, #tpu.memory_space<vmem>>, vector<8x16x128xbf16>
    %2 = arith.extf %1 : vector<8x16x128xbf16> to vector<8x16x128xf32>
    %3 = vector.shape_cast %1 : vector<8x16x128xbf16> to vector<128x128xbf16>
    %c0_5 = arith.constant 0 : index
    %c0_6 = arith.constant 0 : index
    %4 = vector.load %arg3[%c0_5, %c0_6] : memref<128x128xbf16, #tpu.memory_space<vmem>>, vector<128x128xbf16>
    %cst = arith.constant dense<0.000000e+00> : vector<128x128xf32>
    %5 = tpu.matmul %3, %4, %cst {dimension_numbers = #tpu.dot_dimension_numbers<[1], [0], [0], [1], [0, 0, 1, 1], [], []>} : vector<128x128xbf16>, vector<128x128xbf16>, vector<128x128xf32> -> vector<128x128xf32>
    %6 = arith.truncf %5 : vector<128x128xf32> to vector<128x128xbf16>
    %c0_7 = arith.constant 0 : index
    %c0_8 = arith.constant 0 : index
    %7 = vector.load %arg4[%c0_7, %c0_8] : memref<128x128xbf16, #tpu.memory_space<vmem>>, vector<128x128xbf16>
    %cst_9 = arith.constant dense<0.000000e+00> : vector<128x128xf32>
    %8 = tpu.matmul %7, %6, %cst_9 {dimension_numbers = #tpu.dot_dimension_numbers<[1], [0], [0], [1], [0, 0, 1, 1], [], []>} : vector<128x128xbf16>, vector<128x128xbf16>, vector<128x128xf32> -> vector<128x128xf32>
    %9 = vector.shape_cast %8 : vector<128x128xf32> to vector<8x16x128xf32>
    %cst_10 = arith.constant 0.00104058278 : f32
    %10 = vector.broadcast %cst_10 : f32 to vector<8x16x128xf32>
    %11 = arith.mulf %9, %10 : vector<8x16x128xf32>
    %12 = arith.subf %11, %2 : vector<8x16x128xf32>
    %13 = math.absf %12 : vector<8x16x128xf32>
    %cst_11 = arith.constant 5.000000e+00 : f32
    %14 = vector.broadcast %cst_11 : f32 to vector<8x16x128xf32>
    %15 = arith.mulf %14, %13 : vector<8x16x128xf32>
    %cst_12 = arith.constant 1.000000e+00 : f32
    %16 = vector.broadcast %cst_12 : f32 to vector<8x16x128xf32>
    %17 = arith.addf %16, %15 : vector<8x16x128xf32>
    %18 = tpu.iota {dimensions = array<i32: 2>} : vector<8x16x128xi32>
    %c16_i32 = arith.constant 16 : i32
    %19 = vector.broadcast %c16_i32 : i32 to vector<8x16x128xi32>
    %20 = arith.cmpi slt, %18, %19 : vector<8x16x128xi32>
    %21 = arith.extui %20 : vector<8x16x128xi1> to vector<8x16x128xi32>
    %22 = arith.sitofp %21 : vector<8x16x128xi32> to vector<8x16x128xf32>
    %23 = arith.mulf %17, %22 : vector<8x16x128xf32>
    %24 = math.absf %0 : vector<8x16x128xf32>
    %cst_13 = arith.constant 0.000000e+00 : f32
    %25 = vector.broadcast %cst_13 : f32 to vector<8x16x128xf32>
    %26 = arith.subf %25, %24 : vector<8x16x128xf32>
    %27 = math.exp %26 : vector<8x16x128xf32>
    %cst_14 = arith.constant 0.000000e+00 : f32
    %28 = vector.broadcast %cst_14 : f32 to vector<8x16x128xf32>
    %29 = arith.maximumf %0, %28 : vector<8x16x128xf32>
    %30 = arith.mulf %0, %2 : vector<8x16x128xf32>
    %31 = arith.subf %29, %30 : vector<8x16x128xf32>
    %32 = math.log1p %27 : vector<8x16x128xf32>
    %33 = arith.addf %31, %32 : vector<8x16x128xf32>
    %cst_15 = arith.constant 0.000000e+00 : f32
    %34 = vector.broadcast %cst_15 : f32 to vector<8x16x128xf32>
    %35 = arith.cmpf oge, %0, %34 : vector<8x16x128xf32>
    %cst_16 = arith.constant 1.000000e+00 : f32
    %36 = vector.broadcast %cst_16 : f32 to vector<8x16x128xf32>
    %37 = arith.select %35, %36, %27 : vector<8x16x128xi1>, vector<8x16x128xf32>
    %cst_17 = arith.constant 1.000000e+00 : f32
    %38 = vector.broadcast %cst_17 : f32 to vector<8x16x128xf32>
    %39 = arith.addf %38, %27 : vector<8x16x128xf32>
    %40 = tpu.reciprocal %39 {approx = true} : vector<8x16x128xf32> -> vector<8x16x128xf32>
    %41 = arith.mulf %39, %40 : vector<8x16x128xf32>
    %cst_18 = arith.constant 2.000000e+00 : f32
    %42 = vector.broadcast %cst_18 : f32 to vector<8x16x128xf32>
    %43 = arith.subf %42, %41 : vector<8x16x128xf32>
    %44 = arith.mulf %40, %43 : vector<8x16x128xf32>
    %45 = arith.mulf %37, %44 : vector<8x16x128xf32>
    %46 = arith.mulf %45, %2 : vector<8x16x128xf32>
    %cst_19 = arith.constant 1.000000e+00 : f32
    %47 = vector.broadcast %cst_19 : f32 to vector<8x16x128xf32>
    %48 = arith.addf %46, %47 : vector<8x16x128xf32>
    %49 = arith.addf %45, %2 : vector<8x16x128xf32>
    %50 = arith.subf %49, %46 : vector<8x16x128xf32>
    %cst_20 = arith.constant 1.000000e+00 : f32
    %51 = vector.broadcast %cst_20 : f32 to vector<8x16x128xf32>
    %52 = arith.addf %50, %51 : vector<8x16x128xf32>
    %53 = tpu.reciprocal %52 {approx = true} : vector<8x16x128xf32> -> vector<8x16x128xf32>
    %54 = arith.mulf %52, %53 : vector<8x16x128xf32>
    %cst_21 = arith.constant 2.000000e+00 : f32
    %55 = vector.broadcast %cst_21 : f32 to vector<8x16x128xf32>
    %56 = arith.subf %55, %54 : vector<8x16x128xf32>
    %57 = arith.mulf %53, %56 : vector<8x16x128xf32>
    %58 = arith.mulf %48, %57 : vector<8x16x128xf32>
    %cst_22 = arith.constant 1.000000e+00 : f32
    %59 = vector.broadcast %cst_22 : f32 to vector<8x16x128xf32>
    %60 = arith.subf %59, %58 : vector<8x16x128xf32>
    %61 = arith.addf %33, %60 : vector<8x16x128xf32>
    %62 = arith.mulf %23, %61 : vector<8x16x128xf32>
    %cst_23 = arith.constant dense<0.000000e+00> : vector<8x16xf32>
    %63 = vector.multi_reduction <add>, %62, %cst_23 [2] : vector<8x16x128xf32> to vector<8x16xf32>
    %cst_24 = arith.constant dense<0.000000e+00> : vector<8xf32>
    %64 = vector.multi_reduction <add>, %63, %cst_24 [1] : vector<8x16xf32> to vector<8xf32>
    %cst_25 = arith.constant dense<0.000000e+00> : vector<8x16xf32>
    %65 = vector.multi_reduction <add>, %23, %cst_25 [2] : vector<8x16x128xf32> to vector<8x16xf32>
    %cst_26 = arith.constant dense<0.000000e+00> : vector<8xf32>
    %66 = vector.multi_reduction <add>, %65, %cst_26 [1] : vector<8x16xf32> to vector<8xf32>
    %67 = arith.divf %64, %66 : vector<8xf32>
    %68 = vector.shape_cast %67 : vector<8xf32> to vector<8x1xf32>
    %69 = vector.shape_cast %68 : vector<8x1xf32> to vector<8x1xf32>
    %70 = vector.broadcast %69 : vector<8x1xf32> to vector<8x128xf32>
    %c0_27 = arith.constant 0 : index
    %c0_28 = arith.constant 0 : index
    %71 = vector.load %arg5[%c0_27, %c0_28] : memref<8x128xf32, #tpu.memory_space<vmem>>, vector<8x128xf32>
    tpu.vector_store %arg5[%c0_27, %c0_28], %70 {strides = array<i32>} : memref<8x128xf32, #tpu.memory_space<vmem>>, vector<8x128xf32>,
    return
  }
  func.func @transform_0(%arg0: i32) -> (i32, i32, i32) {
    %c0_i32 = arith.constant 0 : i32
    %c0_i32_0 = arith.constant 0 : i32
    %c0_i32_1 = arith.constant 0 : i32
    return %arg0, %c0_i32, %c0_i32_0 : i32, i32, i32
  }
  func.func @transform_1(%arg0: i32) -> (i32, i32, i32) {
    %c0_i32 = arith.constant 0 : i32
    %c0_i32_0 = arith.constant 0 : i32
    %c0_i32_1 = arith.constant 0 : i32
    return %arg0, %c0_i32, %c0_i32_0 : i32, i32, i32
  }
  func.func @transform_2(%arg0: i32) -> (i32, i32) {
    %c0_i32 = arith.constant 0 : i32
    %c0_i32_0 = arith.constant 0 : i32
    %c0_i32_1 = arith.constant 0 : i32
    return %c0_i32, %c0_i32_0 : i32, i32
  }
  func.func @transform_3(%arg0: i32) -> (i32, i32) {
    %c0_i32 = arith.constant 0 : i32
    %c0_i32_0 = arith.constant 0 : i32
    %c0_i32_1 = arith.constant 0 : i32
    return %c0_i32, %c0_i32_0 : i32, i32
  }
  func.func @transform_4(%arg0: i32) -> (i32, i32) {
    %c0_i32 = arith.constant 0 : i32
    %c0_i32_0 = arith.constant 0 : i32
    return %arg0, %c0_i32 : i32, i32
  }
}

</mosaic_0001>

<bundles_post_ra>
// kernel: tpu_custom_call.1
= control target key start
LH: loop header
LB: loop body
LE: loop exit
PB: predicated region body
PF: predicated region fallthrough
CT: control target
= control target key end

     0   :  { %9 = vsyncpa [#allocation3], 0  ;;  %s2939_s0 = inlined_call_operand.hbm [shape: f32[8,16,128], index: 0, kind: input, shape index: {}]   ;;  %s2940_s1 = inlined_call_operand.hbm [shape: bf16[8,16,128], index: 1, kind: input, shape index: {}]   ;;  %s2941_s2 = inlined_call_operand.hbm [shape: bf16[128,128], index: 2, kind: input, shape index: {}]   ;;  %s2942_s3 = inlined_call_operand.hbm [shape: bf16[128,128], index: 3, kind: input, shape index: {}]   ;;  %s2943_s4 = inlined_call_operand.hbm [shape: f32[8,128], index: 4, kind: output, shape index: {}]  }
   0x1   :  { %10 = vsyncpa [#allocation6], 0 }
   0x2   :  { %11 = vsyncpa [#allocation9], 0 }
   0x3   :  { %12 = vsyncpa [#allocation4], 0  ;;  %s1912_s15 = smov [#allocation5]   ;;  %s1794_s19 = scalar_lea.hbm %s2940_s1, 1024 }
   0x4   :  { %s30_s16 = sshll.u32 %s1912_s15, 4  ;;  %p1795_p0 = scmp.ne.s32.totalorder %s2940_s1, %s1794_s19  ;;  %s31_s16 = int_to_ptr.vmem [resolvable:$true] %s30_s16 }
   0x5   :  { %p1798_p1 = scmp.lt.u32.totalorder %s1794_s19, %s2940_s1 }
   0x7   :  { %p1800_p2 = pnand %p1798_p1, %p1795_p0 }
   0x9   :  { %1803 = shalt.err (!%p1800_p2)
}
   0xa   :  { %s1804_s24 = scalar_lea.vmem %s31_s16, 1024  ;;  %p1809_p4 = scmp.lt.s32.totalorder %s31_s16, %s31_s16 }
   0xb   :  { %p1805_p3 = scmp.ne.s32.totalorder %s31_s16, %s1804_s24  ;;  %p1810_p5 = scmp.lt.s32.totalorder %s1804_s24, %s1804_s24 }
   0xd   :  { %p1811_p6 = por %p1810_p5, %p1809_p4 }
   0xf   :  { %p1812_p7 = pnand %p1811_p6, %p1805_p3 }
  0x11   :  { %1815 = shalt.err (!%p1812_p7)
}
  0x12   :  { %s1913_s25 = smov 64   ;;  %s1914_s26 = smov 4  }
  0x13   :  { %36 = dma.hbm_to_vmem [thread:$0]  %s2940_s1, 1024, %s31_s16, [#allocation6], %s1913_s25, %s1913_s25, %s1914_s26  }
  0x14   :  { %s1915_s29 = smov [#allocation2]   ;;  %s1816_s7 = scalar_lea.hbm %s2939_s0, 2048 }
  0x15   :  { %s18_s30 = sshll.u32 %s1915_s29, 4  ;;  %p1817_p8 = scmp.ne.s32.totalorder %s2939_s0, %s1816_s7  ;;  %s19_s30 = int_to_ptr.vmem [resolvable:$true] %s18_s30 }
  0x16   :  { %p1820_p9 = scmp.lt.u32.totalorder %s1816_s7, %s2939_s0 }
  0x18   :  { %p1822_p10 = pnand %p1820_p9, %p1817_p8 }
  0x1a   :  { %1825 = shalt.err (!%p1822_p10)
}
  0x1b   :  { %s1826_s12 = scalar_lea.vmem %s19_s30, 2048  ;;  %p1831_p12 = scmp.lt.s32.totalorder %s19_s30, %s19_s30 }
  0x1c   :  { %p1827_p11 = scmp.ne.s32.totalorder %s19_s30, %s1826_s12  ;;  %p1832_p13 = scmp.lt.s32.totalorder %s1826_s12, %s1826_s12 }
  0x1e   :  { %p1833_p0 = por %p1832_p13, %p1831_p12 }
  0x20   :  { %p1834_p1 = pnand %p1833_p0, %p1827_p11 }
  0x22   :  { %1837 = shalt.err (!%p1834_p1)
}
  0x23   :  { %s1916_s1 = smov 128   ;;  %s1917_s13 = smov 8  }
  0x24   :  { %24 = dma.hbm_to_vmem [thread:$0]  %s2939_s0, 2048, %s19_s30, [#allocation3], %s1916_s1, %s1916_s1, %s1917_s13  }
  0x25   :  { %s1918_s16 = smov [#allocation7]   ;;  %s1919_s18 = smov [#allocation8]  }
  0x26   :  { %s42_s17 = sshll.u32 %s1918_s16, 4  ;;  %s54_s19 = sshll.u32 %s1919_s18, 4  ;;  %s43_s17 = int_to_ptr.vmem [resolvable:$true] %s42_s17  ;;  %s1974_s19 = int_to_ptr.vmem [resolvable:$true] %s54_s19 }
  0x27   :  { %s1838_s22 = scalar_lea.hbm %s2941_s2, 1024 }
  0x28   :  { %p1839_p2 = scmp.ne.s32.totalorder %s2941_s2, %s1838_s22  ;;  %p1842_p3 = scmp.lt.u32.totalorder %s1838_s22, %s2941_s2 }
  0x2a   :  { %p1844_p4 = pnand %p1842_p3, %p1839_p2 }
  0x2c   :  { %1847 = shalt.err (!%p1844_p4)
}
  0x2d   :  { %s1848_s0 = scalar_lea.vmem %s43_s17, 1024  ;;  %p1853_p6 = scmp.lt.s32.totalorder %s43_s17, %s43_s17 }
  0x2e   :  { %p1849_p5 = scmp.ne.s32.totalorder %s43_s17, %s1848_s0  ;;  %p1854_p7 = scmp.lt.s32.totalorder %s1848_s0, %s1848_s0 }
  0x30   :  { %p1855_p8 = por %p1854_p7, %p1853_p6 }
  0x32   :  { %p1856_p9 = pnand %p1855_p8, %p1849_p5 }
  0x34   :  { %1859 = shalt.err (!%p1856_p9)
}
  0x35   :  { %48 = dma.hbm_to_vmem [thread:$0]  %s2941_s2, 1024, %s43_s17, [#allocation6], %s1913_s25, %s1913_s25, %s1914_s26  }
  0x36   :  { %s1860_s7 = scalar_lea.hbm %s2942_s3, 1024 }
  0x37   :  { %p1861_p10 = scmp.ne.s32.totalorder %s2942_s3, %s1860_s7  ;;  %p1864_p11 = scmp.lt.u32.totalorder %s1860_s7, %s2942_s3 }
  0x39   :  { %p1866_p12 = pnand %p1864_p11, %p1861_p10 }
  0x3b   :  { %1869 = shalt.err (!%p1866_p12)
}
  0x3c   :  { %s1870_s12 = scalar_lea.vmem %s1974_s19, 1024  ;;  %p1875_p0 = scmp.lt.s32.totalorder %s1974_s19, %s1974_s19 }
  0x3d   :  { %p1871_p13 = scmp.ne.s32.totalorder %s1974_s19, %s1870_s12  ;;  %p1876_p1 = scmp.lt.s32.totalorder %s1870_s12, %s1870_s12 }
  0x3f   :  { %p1877_p2 = por %p1876_p1, %p1875_p0 }
  0x41   :  { %p1878_p3 = pnand %p1877_p2, %p1871_p13 }
  0x43   :  { %1881 = shalt.err (!%p1878_p3)
}
  0x44   :  { %60 = dma.hbm_to_vmem [thread:$0]  %s2942_s3, 1024, %s1974_s19, [#allocation9], %s1913_s25, %s1913_s25, %s1914_s26  }
  0x45   :  { %1904 = dma.done.wait [#allocation3], 2048  }
  0x46   :  { %1905 = vsyncadd [#allocation3], 4294965248 }
  0x47   :  { %1906 = dma.done.wait [#allocation6], 2048  }
  0x48   :  { %1907 = vsyncadd [#allocation6], 4294965248 }
  0x49   :  { %1908 = dma.done.wait [#allocation9], 1024  }
  0x4a   :  { %1909 = vsyncadd [#allocation9], 4294966272  ;;  %v1632_v0 = vld [vmem:[#allocation7] sm:$0xff]   ;;  %v1633_v1 = vld [vmem:[#allocation7 + $0x8] sm:$0xff]   ;;  %s1921_s3 = smov [#allocation10]  }
  0x4b   :  { %1558 = vmatprep.subr.bf16.mxu0 %v1632_v0  ;;  %v1634_v2 = vld [vmem:[#allocation7 + $0x10] sm:$0xff]   ;;  %v1635_v3 = vld [vmem:[#allocation7 + $0x18] sm:$0xff]   ;;  %v2011_v4 = vld [vmem:[#allocation5] sm:$0xff]   ;;  %s1490_s25 = sshll.u32 %s1921_s3, 4  ;;  %s1491_s25 = int_to_ptr.vmem [resolvable:$true] %s1490_s25 }
  0x4c   :  { %1559 = vmatpush3.bf16.msra.mxu0 %v1632_v0  ;;  %1574 = vmatprep.mubr.bf16.mxu0 %v2011_v4  ;;  %v1636_v5 = vld [vmem:[#allocation7 + $0x20] sm:$0xff]   ;;  %v1637_v6 = vld [vmem:[#allocation7 + $0x28] sm:$0xff]   ;;  %v1638_v7 = vld [vmem:[#allocation7 + $0x30] sm:$0xff]   ;;  %s1882_s26 = scalar_lea.vmem %s1491_s25, 128  ;;  %p1887_p5 = scmp.lt.s32.totalorder %s1491_s25, %s1491_s25 }
  0x4d   :  { %1560 = vmatprep.subr.bf16.mxu0 %v1633_v1  ;;  %v1639_v8 = vld [vmem:[#allocation7 + $0x38] sm:$0xff]   ;;  %v2014_v9 = vld [vmem:[#allocation5 + $0x8] sm:$0xff]   ;;  %v2016_v10 = vld [vmem:[#allocation5 + $0x10] sm:$0xff]   ;;  %p1883_p4 = scmp.ne.s32.totalorder %s1491_s25, %s1882_s26  ;;  %p1888_p6 = scmp.lt.s32.totalorder %s1882_s26, %s1882_s26 }
  0x4e   :  { %v2020_v11 = vld [vmem:[#allocation5 + $0x18] sm:$0xff]   ;;  %v2022_v12 = vld [vmem:[#allocation5 + $0x20] sm:$0xff]   ;;  %v2026_v13 = vld [vmem:[#allocation5 + $0x28] sm:$0xff]  }
  0x4f   :  { %v2028_v14 = vld [vmem:[#allocation5 + $0x30] sm:$0xff]   ;;  %v2032_v15 = vld [vmem:[#allocation5 + $0x38] sm:$0xff]   ;;  %v1648_v16 = vld [vmem:[#allocation8] sm:$0xff]   ;;  %p1889_p7 = por %p1888_p6, %p1887_p5 }
  0x50   :  { %1561 = vmatpush3.bf16.msra.mxu0 %v1633_v1  ;;  %1606 = vmatprep.mubr.bf16.mxu1 %v1648_v16  ;;  %v1649_v41 = vld [vmem:[#allocation8 + $0x8] sm:$0xff]   ;;  %v1650_v42 = vld [vmem:[#allocation8 + $0x10] sm:$0xff]   ;;  %v1651_v43 = vld [vmem:[#allocation8 + $0x18] sm:$0xff]  }
  0x51   :  { %1562 = vmatprep.subr.bf16.mxu0 %v1634_v2  ;;  %v1652_v44 = vld [vmem:[#allocation8 + $0x20] sm:$0xff]   ;;  %v1653_v45 = vld [vmem:[#allocation8 + $0x28] sm:$0xff]   ;;  %v1654_v46 = vld [vmem:[#allocation8 + $0x30] sm:$0xff]   ;;  %p1890_p8 = pnand %p1889_p7, %p1883_p4 }
  0x52   :  { %v1655_v47 = vld [vmem:[#allocation8 + $0x38] sm:$0xff]   ;;  %v2035_v48 = vld [vmem:[#allocation2] sm:$0xff]  ;;  %v2037_v49 = vld [vmem:[#allocation2 + $0x8] sm:$0xff] }
  0x53   :  { %v2039_v50 = vld [vmem:[#allocation2 + $0x10] sm:$0xff]  ;;  %v601_v51 = vand.u32 2147483647, %v2035_v48  ;;  %v2043_v53 = vld [vmem:[#allocation2 + $0x18] sm:$0xff]  ;;  %v602_v54 = vand.u32 2147483647, %v2037_v49 }
  0x54   :  { %1563 = vmatpush3.bf16.msra.mxu0 %v1634_v2  ;;  %v603_v52 = vand.u32 2147483647, %v2039_v50  ;;  %v604_v56 = vand.u32 2147483647, %v2043_v53  ;;  %vm875_vm0 = vcmp.ge.f32.partialorder %v2039_v50, 0.0  ;;  %vm873_vm1 = vcmp.ge.f32.partialorder %v2035_v48, 0.0 }
  0x55   :  { %1564 = vmatprep.subr.bf16.mxu0 %v1635_v3  ;;  %v617_v57 = vsub.f32 0.0, %v601_v51  ;;  %v618_v60 = vsub.f32 0.0, %v602_v54  ;;  %vm874_vm2 = vcmp.ge.f32.partialorder %v2037_v49, 0.0  ;;  %vm876_vm3 = vcmp.ge.f32.partialorder %v2043_v53, 0.0 }
  0x56   :  { %v619_v55 = vsub.f32 0.0, %v603_v52  ;;  %v620_v59 = vsub.f32 0.0, %v604_v56  ;;  %v2097_v52 = vunpack.c.l.bf16 %v2014_v9 }
  0x57   :  { %v633_v61 = vmul.f32 1.442695, %v617_v57  ;;  %v635_v63 = vmul.f32 1.442695, %v618_v60 }
  0x58   :  { %1565 = vmatpush3.bf16.msra.mxu0 %v1635_v3  ;;  %v637_v58 = vmul.f32 1.442695, %v619_v55  ;;  %v639_v62 = vmul.f32 1.442695, %v620_v59  ;;  %v2054_v3 = vld [vmem:[#allocation2 + $0x38] sm:$0xff]  ;;  %2991 = vst [vmem:[#allocation17_spill] sm:$0xff] %v2097_v52 }
  0x59   :  { %1566 = vmatprep.subr.bf16.mxu0 %v1636_v5  ;;  %v608_v16 = vand.u32 2147483647, %v2054_v3  ;;  %vm880_vm4 = vcmp.ge.f32.partialorder %v2054_v3, 0.0 }
  0x5a   :  { %1664 = vpow2.f32 %v637_v58 }
  0x5b   :  { %1666 = vpow2.f32 %v633_v61  ;;  %v2108_v61 = vunpack.c.l.bf16 %v2011_v4 }
  0x5c   :  { %1567 = vmatpush3.bf16.msra.mxu0 %v1636_v5  ;;  %1668 = vpow2.f32 %v639_v62 }
  0x5d   :  { %1568 = vmatprep.subr.bf16.mxu0 %v1637_v6  ;;  %1670 = vpow2.f32 %v635_v63  ;;  %v2111_v63 = vld [vmem:[#allocation2 + $0x48] sm:$0xff] }
  0x5e   :  { %2992 = vst [vmem:[#allocation18_spill] sm:$0xff] %v2111_v63 }
  0x60   :  { %1569 = vmatpush3.bf16.msra.mxu0 %v1637_v6  ;;  %v2058_v6 = vld [vmem:[#allocation2 + $0x30] sm:$0xff] }
  0x61   :  { %1570 = vmatprep.subr.bf16.mxu0 %v1638_v7  ;;  %vm879_vm5 = vcmp.ge.f32.partialorder %v2058_v6, 0.0 }
  0x64   :  { %1571 = vmatpush3.bf16.msra.mxu0 %v1638_v7  ;;  %v2047_v0 = vpop.eup %1664 }
  0x65   :  { %1572 = vmatprep.subr.bf16.mxu0 %v1639_v8  ;;  %v2050_v1 = vadd.f32 1.0, %v2047_v0  ;;  %v2052_v2 = vpop.eup %1666 }
  0x66   :  { %v2056_v5 = vpop.eup %1668  ;;  %v889_v56 = vsel %vm873_vm1, 1.0, %v2052_v2 }
  0x67   :  { %v2060_v7 = vpop.eup %1670  ;;  %1672 = vrcp.f32 %v2050_v1  ;;  %v892_v60 = vsel %vm876_vm3, 1.0, %v2056_v5 }
  0x68   :  { %1573 = vmatpush3.bf16.msra.mxu0 %v1639_v8  ;;  %v2063_v8 = vadd.f32 1.0, %v2052_v2  ;;  %v890_v62 = vsel %vm874_vm2, 1.0, %v2060_v7 }
  0x6a   :  { %1674 = vrcp.f32 %v2063_v8 }
  0x6b   :  { %1575 = vmatmul.mubr.bf16.vlgmr.msra.gmra.mrb[0].mxu0 %v2014_v9 }
  0x6c   :  { %1578 = vmatprep.mubr.bf16.mxu0 %v2016_v10 }
  0x73   :  { %1579 = vmatmul.mubr.bf16.gmra.mrb[4].mxu0 %v2020_v11 }
  0x74   :  { %1582 = vmatprep.mubr.bf16.mxu0 %v2022_v12 }
  0x7b   :  { %1583 = vmatmul.mubr.bf16.gmra.mrb[8].mxu0 %v2026_v13 }
  0x7c   :  { %1586 = vmatprep.mubr.bf16.mxu0 %v2028_v14 }
  0x83   :  { %1587 = vmatmul.mubr.bf16.gmra.mrb[12].mxu0 %v2032_v15 }
 0x13e   :  { %v1576_v17 = vpop.f32.mrb[0].mxu0 }
 0x13f   :  { %v268_v18 = vpop.f32.mrb[1].mxu0 }
 0x140   :  { %v1577_v19 = vpop.f32.mrb[2].mxu0 }
 0x141   :  { %v332_v20 = vpack.c.bf16 %v1577_v19, %v1576_v17  ;;  %v271_v21 = vpop.f32.mrb[3].mxu0  ;;  %v2068_v17 = vadd.f32 1.0, %v2056_v5  ;;  %v2072_v19 = vadd.f32 1.0, %v2060_v7 }
 0x142   :  { %v331_v22 = vpack.c.bf16 %v271_v21, %v268_v18  ;;  %v607_v18 = vand.u32 2147483647, %v2058_v6  ;;  %v2075_v21 = vld [vmem:[#allocation2 + $0x28] sm:$0xff] }
 0x143   :  { %2989 = vst [vmem:[#allocation15_spill] sm:$0xff] %v2075_v21  ;;  %1676 = vrcp.f32 %v2068_v17  ;;  %vm878_vm6 = vcmp.ge.f32.partialorder %v2075_v21, 0.0 }
 0x144   :  { %1590 = vmatprep.subr.bf16.mxu1 %v331_v22  ;;  %1678 = vrcp.f32 %v2072_v19 }
 0x145   :  { %1591 = vmatpush3.bf16.msra.mxu1 %v331_v22  ;;  %v623_v22 = vsub.f32 0.0, %v607_v18 }
 0x146   :  { %v1580_v23 = vpop.f32.mrb[4].mxu0  ;;  %1592 = vmatprep.subr.bf16.mxu1 %v332_v20 }
 0x147   :  { %v284_v24 = vpop.f32.mrb[5].mxu0 }
 0x148   :  { %v1581_v25 = vpop.f32.mrb[6].mxu0 }
 0x149   :  { %v334_v26 = vpack.c.bf16 %v1581_v25, %v1580_v23  ;;  %v287_v27 = vpop.f32.mrb[7].mxu0  ;;  %1593 = vmatpush3.bf16.msra.mxu1 %v332_v20  ;;  %v624_v20 = vsub.f32 0.0, %v608_v16  ;;  %v606_v23 = vand.u32 2147483647, %v2075_v21  ;;  %v645_v25 = vmul.f32 1.442695, %v623_v22 }
 0x14a   :  { %v333_v28 = vpack.c.bf16 %v287_v27, %v284_v24 }
 0x14b   :  { %v647_v24 = vmul.f32 1.442695, %v624_v20  ;;  %v622_v27 = vsub.f32 0.0, %v606_v23  ;;  %v2121_v23 = vunpack.c.h.bf16 %v2014_v9 }
 0x14c   :  { %1594 = vmatprep.subr.bf16.mxu1 %v333_v28 }
 0x14d   :  { %1595 = vmatpush3.bf16.msra.mxu1 %v333_v28  ;;  %1680 = vpow2.f32 %v647_v24  ;;  %v2080_v28 = vld [vmem:[#allocation2 + $0x20] sm:$0xff]  ;;  %2993 = vst [vmem:[#allocation19_spill] sm:$0xff] %v2121_v23 }
 0x14e   :  { %v1584_v29 = vpop.f32.mrb[8].mxu0  ;;  %1596 = vmatprep.subr.bf16.mxu1 %v334_v26  ;;  %2990 = vst [vmem:[#allocation16_spill] sm:$0xff] %v2080_v28  ;;  %1682 = vpow2.f32 %v645_v25  ;;  %v2125_v25 = vunpack.c.h.bf16 %v2011_v4  ;;  %v2140_v4 = vld [vmem:[#allocation2 + $0x40] sm:$0xff]  ;;  %vm877_vm7 = vcmp.ge.f32.partialorder %v2080_v28, 0.0 }
 0x14f   :  { %v300_v30 = vpop.f32.mrb[9].mxu0  ;;  %2994 = vst [vmem:[#allocation20_spill] sm:$0xff] %v2140_v4 }
 0x150   :  { %v1585_v31 = vpop.f32.mrb[10].mxu0 }
 0x151   :  { %v336_v32 = vpack.c.bf16 %v1585_v31, %v1584_v29  ;;  %v303_v33 = vpop.f32.mrb[11].mxu0  ;;  %1597 = vmatpush3.bf16.msra.mxu1 %v334_v26  ;;  %v1673_v26 = vpop.eup %1672 }
 0x152   :  { %v335_v34 = vpack.c.bf16 %v303_v33, %v300_v30  ;;  %v939_v29 = vmul.f32 %v1673_v26, %v2050_v1  ;;  %v1675_v30 = vpop.eup %1674  ;;  %v605_v33 = vand.u32 2147483647, %v2080_v28 }
 0x153   :  { %v1677_v31 = vpop.eup %1676 }
 0x154   :  { %1598 = vmatprep.subr.bf16.mxu1 %v335_v34 }
 0x155   :  { %1599 = vmatpush3.bf16.msra.mxu1 %v335_v34  ;;  %v1679_v34 = vpop.eup %1678 }
 0x156   :  { %v1588_v35 = vpop.f32.mrb[12].mxu0  ;;  %1600 = vmatprep.subr.bf16.mxu1 %v336_v32 }
 0x157   :  { %v316_v36 = vpop.f32.mrb[13].mxu0 }
 0x158   :  { %v1589_v37 = vpop.f32.mrb[14].mxu0 }
 0x159   :  { %v338_v38 = vpack.c.bf16 %v1589_v37, %v1588_v35  ;;  %v319_v39 = vpop.f32.mrb[15].mxu0  ;;  %1601 = vmatpush3.bf16.msra.mxu1 %v336_v32  ;;  %v643_v32 = vmul.f32 1.442695, %v622_v27  ;;  %v937_v35 = vmul.f32 %v1675_v30, %v2063_v8  ;;  %v940_v37 = vmul.f32 %v1677_v31, %v2068_v17 }
 0x15a   :  { %v337_v40 = vpack.c.bf16 %v319_v39, %v316_v36  ;;  %v955_v36 = vsub.f32 2.0, %v939_v29  ;;  %v621_v39 = vsub.f32 0.0, %v605_v33  ;;  %v610_v27 = vand.u32 2147483647, %v2111_v63 }
 0x15b   :  { %1684 = vpow2.f32 %v643_v32  ;;  %v2207_v63 = vunpack.c.l.bf16 %v2026_v13 }
 0x15c   :  { %1602 = vmatprep.subr.bf16.mxu1 %v337_v40 }
 0x15d   :  { %1603 = vmatpush3.bf16.msra.mxu1 %v337_v40  ;;  %v953_v40 = vsub.f32 2.0, %v937_v35  ;;  %3007 = vst [vmem:[#allocation33_spill] sm:$0xff] %v2207_v63 }
 0x15e   :  { %1604 = vmatprep.subr.bf16.mxu1 %v338_v38 }
 0x15f   :  { %v969_v51 = vmul.f32 %v1675_v30, %v953_v40 }
 0x161   :  { %1605 = vmatpush3.bf16.msra.mxu1 %v338_v38  ;;  %v938_v38 = vmul.f32 %v1679_v34, %v2072_v19  ;;  %v985_v18 = vmul.f32 %v969_v51, %v889_v56 }
 0x163   :  { %v1033_v30 = vadd.f32 %v985_v18, %v2108_v61  ;;  %v2134_v32 = vmul.f32 %v985_v18, %v2108_v61 }
 0x164   :  { %1607 = vmatmul.mubr.bf16.vlgmr.msra.gmra.mrb[0].mxu1 %v1649_v41  ;;  %v971_v41 = vmul.f32 %v1673_v26, %v955_v36 }
 0x165   :  { %1610 = vmatprep.mubr.bf16.mxu1 %v1650_v42  ;;  %v2088_v42 = vpop.eup %1680  ;;  %v1049_v40 = vsub.f32 %v1033_v30, %v2134_v32  ;;  %v2177_v30 = vunpack.c.h.bf16 %v2020_v11 }
 0x166   :  { %v2100_v55 = vadd.f32 1.0, %v2088_v42  ;;  %v896_v63 = vsel %vm880_vm4, 1.0, %v2088_v42 }
 0x16c   :  { %1611 = vmatmul.mubr.bf16.gmra.mrb[4].mxu1 %v1651_v43  ;;  %v891_v43 = vsel %vm875_vm0, 1.0, %v2047_v0 }
 0x16d   :  { %1614 = vmatprep.mubr.bf16.mxu1 %v1652_v44  ;;  %v956_v44 = vsub.f32 2.0, %v940_v37  ;;  %v987_v54 = vmul.f32 %v971_v41, %v891_v43  ;;  %v626_v37 = vsub.f32 0.0, %v610_v27  ;;  %v609_v41 = vand.u32 2147483647, %v2140_v4 }
 0x16f   :  { %v972_v57 = vmul.f32 %v1677_v31, %v956_v44  ;;  %v2116_v20 = vmul.f32 %v987_v54, %v2097_v52  ;;  %v1035_v22 = vadd.f32 %v987_v54, %v2097_v52  ;;  %v2156_v44 = vld [vmem:[#allocation2 + $0x50] sm:$0xff]  ;;  %v2160_v54 = vunpack.c.l.bf16 %v2016_v10 }
 0x170   :  { %2997 = vst [vmem:[#allocation23_spill] sm:$0xff] %v2156_v44 }
 0x171   :  { %v988_v24 = vmul.f32 %v972_v57, %v892_v60  ;;  %v1051_v31 = vsub.f32 %v1035_v22, %v2116_v20  ;;  %2998 = vst [vmem:[#allocation24_spill] sm:$0xff] %v2160_v54  ;;  %v651_v57 = vmul.f32 1.442695, %v626_v37  ;;  %v2164_v60 = vunpack.c.h.bf16 %v2016_v10 }
 0x172   :  { %v611_v22 = vand.u32 2147483647, %v2156_v44 }
 0x173   :  { %v2137_v9 = vmul.f32 %v988_v24, %v2121_v23  ;;  %v1036_v33 = vadd.f32 %v988_v24, %v2121_v23  ;;  %2999 = vst [vmem:[#allocation25_spill] sm:$0xff] %v2164_v60  ;;  %v2174_v24 = vadd.f32 1.0, %v1049_v40 }
 0x174   :  { %1615 = vmatmul.mubr.bf16.gmra.mrb[8].mxu1 %v1653_v45  ;;  %v2091_v45 = vpop.eup %1682 }
 0x175   :  { %1618 = vmatprep.mubr.bf16.mxu1 %v1654_v46  ;;  %v954_v46 = vsub.f32 2.0, %v938_v38  ;;  %v2104_v58 = vadd.f32 1.0, %v2091_v45  ;;  %v2113_v16 = vpop.eup %1684 }
 0x176   :  { %v2129_v29 = vadd.f32 1.0, %v2113_v16 }
 0x177   :  { %v970_v59 = vmul.f32 %v1679_v34, %v954_v46  ;;  %v2142_v34 = vld [vmem:[#allocation2 + $0x58] sm:$0xff]  ;;  %v580_v46 = vlaneseq }
 0x178   :  { %2995 = vst [vmem:[#allocation21_spill] sm:$0xff] %v2142_v34  ;;  %v612_v43 = vand.u32 2147483647, %v2142_v34 }
 0x179   :  { %v986_v26 = vmul.f32 %v970_v59, %v890_v62  ;;  %v2167_v62 = vunpack.c.l.bf16 %v2020_v11  ;;  %v1258_v40 = vshrl.u32 %v580_v46, 7  ;;  %v627_v11 = vsub.f32 0.0, %v611_v22 }
 0x17a   :  { %v628_v27 = vsub.f32 0.0, %v612_v43  ;;  %v2192_v43 = vld [vmem:[#allocation2 + $0x68] sm:$0xff] }
 0x17b   :  { %v1034_v35 = vadd.f32 %v986_v26, %v2125_v25  ;;  %v2146_v36 = vmul.f32 %v986_v26, %v2125_v25  ;;  %v625_v26 = vsub.f32 0.0, %v609_v41  ;;  %3002 = vst [vmem:[#allocation28_spill] sm:$0xff] %v2192_v43 }
 0x17c   :  { %1619 = vmatmul.mubr.bf16.gmra.mrb[12].mxu1 %v1655_v47  ;;  %v641_v47 = vmul.f32 1.442695, %v621_v39  ;;  %v2151_v39 = vadd.f32 1.0, %v1051_v31  ;;  %v2179_v31 = vand.u32 127, %v580_v46 }
 0x17d   :  { %v1050_v56 = vsub.f32 %v1034_v35, %v2146_v36  ;;  %v2185_v35 = vunpack.c.l.bf16 %v2022_v12  ;;  %v649_v34 = vmul.f32 1.442695, %v625_v26  ;;  %v614_v26 = vand.u32 2147483647, %v2192_v43 }
 0x17e   :  { %1686 = vpow2.f32 %v641_v47  ;;  %v1052_v47 = vsub.f32 %v1036_v33, %v2137_v9  ;;  %v1261_v41 = vadd.s32 4294967288, %v2179_v31  ;;  %vm582_vm9 = vcmp.lt.s32.totalorder %v2179_v31, 16 }
 0x17f   :  { %1688 = vrcp.f32 %v2100_v55  ;;  %3001 = vst [vmem:[#allocation27_spill] sm:$0xff] %v2185_v35  ;;  %v2187_v37 = vadd.f32 1.0, %v1050_v56  ;;  %v655_v35 = vmul.f32 1.442695, %v628_v27  ;;  %v2198_v56 = vld [vmem:[#allocation2 + $0x60] sm:$0xff]  ;;  %v630_v43 = vsub.f32 0.0, %v614_v26 }
 0x180   :  { %1690 = vrcp.f32 %v2104_v58  ;;  %v2181_v10 = vadd.f32 1.0, %v1052_v47  ;;  %v2195_v47 = vunpack.c.h.bf16 %v2022_v12  ;;  %3004 = vst [vmem:[#allocation30_spill] sm:$0xff] %v2198_v56  ;;  %v2203_v46 = vsub.s32 %v1261_v41, %v1258_v40 }
 0x181   :  { %1692 = vrcp.f32 %v2129_v29  ;;  %v653_v27 = vmul.f32 1.442695, %v627_v11  ;;  %v2217_v41 = vunpack.c.h.bf16 %v2026_v13  ;;  %v2248_v26 = vunpack.c.h.bf16 %v2032_v15 }
 0x182   :  { %1694 = vrcp.f32 %v2151_v39  ;;  %3003 = vst [vmem:[#allocation29_spill] sm:$0xff] %v2195_v47  ;;  %3006 = vst [vmem:[#allocation32_spill] sm:$0xff] %v2203_v46  ;;  %v2224_v46 = vunpack.c.l.bf16 %v2028_v14  ;;  %v895_v47 = vsel %vm879_vm5, 1.0, %v2091_v45 }
 0x183   :  { %1696 = vpow2.f32 %v651_v57  ;;  %v2201_v57 = vsub.s32 %v2179_v31, %v1258_v40  ;;  %v2214_v40 = vld [vmem:[#allocation2 + $0x78] sm:$0xff]  ;;  %3009 = vst [vmem:[#allocation35_spill] sm:$0xff] %v2217_v41  ;;  %3015 = vst [vmem:[#allocation41_spill] sm:$0xff] %v2248_v26  ;;  %v667_v26 = vmax.f32 %v2039_v50, 0.0 }
 0x184   :  { %3008 = vst [vmem:[#allocation34_spill] sm:$0xff] %v2214_v40  ;;  %3011 = vst [vmem:[#allocation37_spill] sm:$0xff] %v2224_v46  ;;  %v616_v41 = vand.u32 2147483647, %v2214_v40  ;;  %v2261_v46 = vsel %vm878_vm6, 1.0, %v2113_v16  ;;  %v683_v40 = vmul.f32 %v2097_v52, %v2039_v50  ;;  %v1019_v50 = vadd.f32 1.0, %v2116_v20 }
 0x185   :  { %3005 = vst [vmem:[#allocation31_spill] sm:$0xff] %v2201_v57  ;;  %v613_v57 = vand.u32 2147483647, %v2198_v56  ;;  %v1020_v20 = vadd.f32 1.0, %v2137_v9 }
 0x188   :  { %v2149_v38 = vpop.eup %1686 }
 0x189   :  { %2996 = vst [vmem:[#allocation22_spill] sm:$0xff] %v2149_v38  ;;  %v1689_v51 = vpop.eup %1688  ;;  %v2170_v18 = vadd.f32 1.0, %v2149_v38 }
 0x18a   :  { %v1691_v59 = vpop.eup %1690  ;;  %v944_v33 = vmul.f32 %v1689_v51, %v2100_v55 }
 0x18b   :  { %3000 = vst [vmem:[#allocation26_spill] sm:$0xff] %v2170_v18  ;;  %v943_v44 = vmul.f32 %v1691_v59, %v2104_v58  ;;  %1698 = vrcp.f32 %v2170_v18  ;;  %v1693_v4 = vpop.eup %1692 }
 0x18c   :  { %1700 = vrcp.f32 %v2174_v24  ;;  %v960_v22 = vsub.f32 2.0, %v944_v33  ;;  %v942_v33 = vmul.f32 %v1693_v4, %v2129_v29  ;;  %v1695_v56 = vpop.eup %1694 }
 0x18d   :  { %1702 = vrcp.f32 %v2181_v10  ;;  %v959_v12 = vsub.f32 2.0, %v943_v44  ;;  %v2221_v44 = vld [vmem:[#allocation2 + $0x70] sm:$0xff]  ;;  %v2233_v60 = vpop.eup %1696 }
 0x18e   :  { %1704 = vrcp.f32 %v2187_v37  ;;  %3010 = vst [vmem:[#allocation36_spill] sm:$0xff] %v2221_v44  ;;  %v976_v11 = vmul.f32 %v1689_v51, %v960_v22  ;;  %v615_v54 = vand.u32 2147483647, %v2221_v44  ;;  %3013 = vst [vmem:[#allocation39_spill] sm:$0xff] %v2233_v60  ;;  %v734_v51 = vmul.f32 -0.5, %v2047_v0 }
 0x18f   :  { %1706 = vlog2.f32 %v2050_v1  ;;  %v2227_v1 = vunpack.c.h.bf16 %v2028_v14  ;;  %v975_v13 = vmul.f32 %v1691_v59, %v959_v12  ;;  %v2236_v14 = vunpack.c.l.bf16 %v2032_v15 }
 0x190   :  { %1708 = vpow2.f32 %v649_v34  ;;  %v629_v34 = vsub.f32 0.0, %v613_v57  ;;  %v1099_v22 = vmul.f32 %v1695_v56, %v2151_v39  ;;  %v992_v12 = vmul.f32 %v976_v11, %v896_v63 }
 0x191   :  { %3012 = vst [vmem:[#allocation38_spill] sm:$0xff] %v2227_v1  ;;  %1710 = vpow2.f32 %v655_v35  ;;  %3014 = vst [vmem:[#allocation40_spill] sm:$0xff] %v2236_v14  ;;  %v958_v35 = vsub.f32 2.0, %v942_v33  ;;  %v2251_v14 = vsub.f32 0.0, %v616_v41  ;;  %v2254_v33 = vmul.f32 1.442695, %v630_v43 }
 0x192   :  { %1712 = vpow2.f32 %v653_v27  ;;  %v991_v27 = vmul.f32 %v975_v13, %v895_v47  ;;  %v2256_v63 = vmul.f32 1.442695, %v629_v34  ;;  %v2258_v39 = vsub.f32 0.0, %v615_v54 }
 0x193   :  { %1714 = vlog2.f32 %v2068_v17  ;;  %3016 = vst [vmem:[#allocation42_spill] sm:$0xff] %v2251_v14  ;;  %3017 = vst [vmem:[#allocation43_spill] sm:$0xff] %v2254_v33  ;;  %v735_v44 = vadd.f32 1.0, %v734_v51  ;;  %v2263_v15 = vmul.f32 %v1693_v4, %v958_v35  ;;  %v737_v41 = vand.u32 2147483647, %v2047_v0 }
 0x194   :  { %1716 = vlog2.f32 %v2072_v19  ;;  %3018 = vst [vmem:[#allocation44_spill] sm:$0xff] %v2256_v63  ;;  %3019 = vst [vmem:[#allocation45_spill] sm:$0xff] %v2258_v39  ;;  %v2266_v19 = vsel %vm877_vm7, 1.0, %v2149_v38  ;;  %v2270_v43 = vmul.f32 %v992_v12, %v2177_v30  ;;  %v743_v34 = vmul.f32 -0.5, %v2056_v5 }
 0x195   :  { %v2240_v59 = vpop.eup %1698  ;;  %1718 = vlog2.f32 %v2063_v8  ;;  %3020 = vst [vmem:[#allocation46_spill] sm:$0xff] %v2266_v19  ;;  %v1115_v8 = vsub.f32 2.0, %v1099_v22  ;;  %v2280_v4 = vadd.f32 %v992_v12, %v2177_v30  ;;  %v2283_v51 = vmul.f32 %v991_v27, %v2167_v62 }
 0x196   :  { %v2245_v57 = vpop.eup %1700  ;;  %v2274_v54 = vmul.f32 %v2240_v59, %v2170_v18  ;;  %v2286_v35 = vadd.f32 %v991_v27, %v2167_v62  ;;  %v736_v14 = vmul.f32 %v2047_v0, %v735_v44  ;;  %v725_v63 = vmul.f32 -0.5, %v2060_v7 }
 0x197   :  { %v1703_v17 = vpop.eup %1702  ;;  %v1097_v39 = vmul.f32 %v2245_v57, %v2174_v24  ;;  %vm2301_vm8 = vcmp.lt.f32.partialorder %v737_v41, 0.0004427343  ;;  %v1131_v52 = vmul.f32 %v1695_v56, %v1115_v8  ;;  %v716_v0 = vmul.f32 -0.5, %v2052_v2 }
 0x198   :  { %v1705_v11 = vpop.eup %1704  ;;  %v1100_v1 = vmul.f32 %v1703_v17, %v2181_v10  ;;  %v2307_v10 = vadd.f32 1.0, %v2233_v60  ;;  %v1056_v44 = vsub.f32 %v2280_v4, %v2270_v43  ;;  %v699_v41 = vsub.f32 %v667_v26, %v683_v40 }
 0x199   :  { %v1707_v47 = vpop.eup %1706  ;;  %v1098_v27 = vmul.f32 %v1705_v11, %v2187_v37  ;;  %v1113_v28 = vsub.f32 2.0, %v1097_v39  ;;  %v726_v60 = vadd.f32 1.0, %v725_v63  ;;  %v684_v4 = vmul.f32 %v2121_v23, %v2043_v53 }
 0x19a   :  { %v2276_v13 = vpop.eup %1708  ;;  %v733_v12 = vmul.f32 0.6931472, %v1707_v47  ;;  %v744_v47 = vadd.f32 1.0, %v743_v34  ;;  %v1116_v33 = vsub.f32 2.0, %v1100_v1  ;;  %v668_v34 = vmax.f32 %v2043_v53, 0.0 }
 0x19b   :  { %v2288_v22 = vpop.eup %1710  ;;  %v2313_v37 = vadd.f32 1.0, %v2276_v13  ;;  %v1114_v18 = vsub.f32 2.0, %v1098_v27  ;;  %v746_v40 = vand.u32 2147483647, %v2056_v5  ;;  %v728_v1 = vand.u32 2147483647, %v2060_v7 }
 0x19c   :  { %v2299_v38 = vpop.eup %1712  ;;  %v739_v8 = vsel %vm2301_vm8, %v736_v14, %v733_v12  ;;  %v745_v39 = vmul.f32 %v2056_v5, %v744_v47  ;;  %v666_v14 = vmax.f32 %v2037_v49, 0.0  ;;  %v1132_v19 = vmul.f32 %v1703_v17, %v1116_v33 }
 0x19d   :  { %3021 = vst [vmem:[#allocation47_spill] sm:$0xff] %v2299_v38  ;;  %v1715_v24 = vpop.eup %1714  ;;  %v1147_v38 = vmul.f32 %v1131_v52, %v1019_v50  ;;  %v682_v63 = vmul.f32 %v2125_v25, %v2037_v49  ;;  %v717_v52 = vadd.f32 1.0, %v716_v0  ;;  %v727_v27 = vmul.f32 %v2060_v7, %v726_v60 }
 0x19e   :  { %v1717_v56 = vpop.eup %1716  ;;  %v742_v26 = vmul.f32 0.6931472, %v1715_v24  ;;  %v1018_v53 = vadd.f32 1.0, %v2146_v36  ;;  %v1130_v50 = vmul.f32 %v1705_v11, %v1114_v18  ;;  %v719_v23 = vand.u32 2147483647, %v2052_v2 }
 0x19f   :  { %v1719_v21 = vpop.eup %1718  ;;  %v724_v12 = vmul.f32 0.6931472, %v1717_v56  ;;  %v700_v5 = vsub.f32 %v668_v34, %v684_v4  ;;  %vm2333_vm10 = vcmp.lt.f32.partialorder %v746_v40, 0.0004427343  ;;  %vm2337_vm11 = vcmp.lt.f32.partialorder %v728_v1, 0.0004427343 }
 0x1a0   :  { %v665_v49 = vmax.f32 %v2035_v48, 0.0  ;;  %v681_v7 = vmul.f32 %v2108_v61, %v2035_v48  ;;  %v1017_v36 = vadd.f32 1.0, %v2134_v32  ;;  %v1129_v60 = vmul.f32 %v2245_v57, %v1113_v28 }
 0x1a1   :  { %v1148_v18 = vmul.f32 %v1132_v19, %v1020_v20  ;;  %v698_v33 = vsub.f32 %v666_v14, %v682_v63  ;;  %v715_v11 = vmul.f32 0.6931472, %v1719_v21  ;;  %v718_v24 = vmul.f32 %v2052_v2, %v717_v52 }
 0x1a2   :  { %v748_v47 = vsel %vm2333_vm10, %v745_v39, %v742_v26  ;;  %v730_v0 = vsel %vm2337_vm11, %v727_v27, %v724_v12  ;;  %v1146_v56 = vmul.f32 %v1130_v50, %v1018_v53  ;;  %vm2351_vm12 = vcmp.lt.f32.partialorder %v719_v23, 0.0004427343 }
 0x1a3   :  { %v859_v48 = vadd.f32 %v739_v8, %v699_v41  ;;  %1720 = vlog2.f32 %v2100_v55  ;;  %v2356_v28 = vadd.f32 1.0, %v1056_v44  ;;  %v1163_v32 = vsub.f32 1.0, %v1147_v38 }
 0x1a4   :  { %v697_v21 = vsub.f32 %v665_v49, %v681_v7  ;;  %v1145_v57 = vmul.f32 %v1129_v60, %v1017_v36  ;;  %v779_v2 = vmul.f32 -0.5, %v2088_v42  ;;  %v860_v20 = vadd.f32 %v748_v47, %v700_v5  ;;  %v3036_v49 = vld [vmem:[#allocation25_spill] sm:$0xff]  ;;  %v3037_v60 = vld [vmem:[#allocation47_spill] sm:$0xff] }
 0x1a5   :  { %v1164_v4 = vsub.f32 1.0, %v1148_v18  ;;  %v858_v40 = vadd.f32 %v730_v0, %v698_v33  ;;  %v721_v1 = vsel %vm2351_vm12, %v718_v24, %v715_v11  ;;  %v1162_v23 = vsub.f32 1.0, %v1146_v56  ;;  %v3038_v11 = vld [vmem:[#allocation15_spill] sm:$0xff]  ;;  %v3039_v0 = vld [vmem:[#allocation26_spill] sm:$0xff] }
 0x1a6   :  { %v672_v26 = vmax.f32 %v2054_v3, 0.0  ;;  %v688_v41 = vmul.f32 %v2177_v30, %v2054_v3  ;;  %1722 = vlog2.f32 %v2104_v58  ;;  %v782_v55 = vand.u32 2147483647, %v2088_v42 }
 0x1a7   :  { %1724 = vrcp.f32 %v2356_v28  ;;  %v990_v38 = vmul.f32 %v2263_v15, %v2261_v46  ;;  %v957_v44 = vsub.f32 2.0, %v2274_v54  ;;  %v1920_v8 = vmov 0.0  }
 0x1a8   :  { %v2372_v39 = vsel %vm582_vm9, 1.0, %v1920_v8  ;;  %v857_v14 = vadd.f32 %v721_v1, %v697_v21  ;;  %v1161_v19 = vsub.f32 1.0, %v1145_v57  ;;  %v780_v63 = vadd.f32 1.0, %v779_v2  ;;  %v3040_v57 = vld [vmem:[#allocation16_spill] sm:$0xff] }
 0x1a9   :  { %v2374_v3 = vadd.f32 %v1163_v32, %v859_v48  ;;  %v671_v58 = vmax.f32 %v2058_v6, 0.0  ;;  %v687_v12 = vmul.f32 %v2167_v62, %v2058_v6  ;;  %v3030_v46 = vsub.f32 %v2286_v35, %v2283_v51  ;;  %v3047_v8 = vld [vmem:[#allocation44_spill] sm:$0xff] }
 0x1aa   :  { %v2384_v54 = vadd.f32 %v1164_v4, %v860_v20  ;;  %v2386_v31 = vadd.f32 %v1162_v23, %v858_v40  ;;  %v704_v52 = vsub.f32 %v672_v26, %v688_v41  ;;  %1726 = vlog2.f32 %v2129_v29  ;;  %v3041_v20 = vld [vmem:[#allocation24_spill] sm:$0xff]  ;;  %v3042_v40 = vld [vmem:[#allocation43_spill] sm:$0xff] }
 0x1ab   :  { %v2382_v15 = vadd.f32 1.0, %v3030_v46  ;;  %vm2389_vm13 = vcmp.lt.f32.partialorder %v782_v55, 0.0004427343  ;;  %v2394_v53 = vadd.f32 1.0, %v2270_v43  ;;  %v770_v6 = vmul.f32 -0.5, %v2091_v45 }
 0x1ac   :  { %3031 = vst [vmem:[#allocation48_spill] sm:$0xff] %v2384_v54  ;;  %3032 = vst [vmem:[#allocation49_spill] sm:$0xff] %v2386_v31  ;;  %1728 = vrcp.f32 %v2307_v10  ;;  %v2398_v35 = vadd.f32 %v1161_v19, %v857_v14  ;;  %v781_v50 = vmul.f32 %v2088_v42, %v780_v63  ;;  %v2403_v5 = vadd.f32 1.0, %v2288_v22  ;;  %v3062_v31 = vld [vmem:[#allocation45_spill] sm:$0xff] }
 0x1ad   :  { %1730 = vrcp.f32 %v2313_v37  ;;  %v1721_v29 = vpop.eup %1720  ;;  %v2405_v9 = vsub.f32 %v671_v58, %v687_v12  ;;  %v773_v17 = vand.u32 2147483647, %v2091_v45  ;;  %v761_v43 = vmul.f32 -0.5, %v2113_v16 }
 0x1ae   :  { %3035 = vst [vmem:[#allocation50_spill] sm:$0xff] %v2398_v35  ;;  %1732 = vrcp.f32 %v2382_v15  ;;  %v1006_v7 = vmul.f32 %v990_v38, %v3036_v49  ;;  %v1038_v36 = vadd.f32 %v990_v38, %v3036_v49  ;;  %v973_v42 = vmul.f32 %v2240_v59, %v957_v44  ;;  %v3046_v38 = vld [vmem:[#allocation22_spill] sm:$0xff] }
 0x1af   :  { %v2414_v18 = vadd.f32 1.0, %v3037_v60  ;;  %v771_v33 = vadd.f32 1.0, %v770_v6  ;;  %v670_v24 = vmax.f32 %v3038_v11, 0.0  ;;  %v686_v47 = vmul.f32 %v3036_v49, %v3038_v11 }
 0x1b0   :  { %1734 = vlog2.f32 %v3039_v0  ;;  %v1723_v56 = vpop.eup %1722  ;;  %v778_v34 = vmul.f32 0.6931472, %v1721_v29  ;;  %v2421_v48 = vadd.f32 1.0, %v2283_v51  ;;  %v764_v32 = vand.u32 2147483647, %v2113_v16  ;;  %v3045_v51 = vld [vmem:[#allocation46_spill] sm:$0xff] }
 0x1b1   :  { %1736 = vrcp.f32 %v2403_v5  ;;  %v1725_v59 = vpop.eup %1724  ;;  %v762_v21 = vadd.f32 1.0, %v761_v43  ;;  %v669_v2 = vmax.f32 %v3040_v57, 0.0  ;;  %v685_v4 = vmul.f32 %v3041_v20, %v3040_v57 }
 0x1b2   :  { %1738 = vpow2.f32 %v3042_v40  ;;  %vm2429_vm14 = vcmp.lt.f32.partialorder %v773_v17, 0.0004427343  ;;  %v1054_v23 = vsub.f32 %v1038_v36, %v1006_v7  ;;  %v989_v26 = vmul.f32 %v973_v42, %v3045_v51  ;;  %v3050_v17 = vld [vmem:[#allocation39_spill] sm:$0xff] }
 0x1b3   :  { %1740 = vrcp.f32 %v2414_v18  ;;  %v772_v41 = vmul.f32 %v2091_v45, %v771_v33  ;;  %v2436_v55 = vsub.f32 %v670_v24, %v686_v47  ;;  %v752_v44 = vmul.f32 -0.5, %v3046_v38 }
 0x1b4   :  { %1742 = vpow2.f32 %v3047_v8  ;;  %v1727_v14 = vpop.eup %1726  ;;  %v784_v19 = vsel %vm2389_vm13, %v781_v50, %v778_v34  ;;  %v1104_v63 = vmul.f32 %v1725_v59, %v2356_v28  ;;  %v769_v58 = vmul.f32 0.6931472, %v1723_v56  ;;  %v3052_v56 = vld [vmem:[#allocation18_spill] sm:$0xff] }
 0x1b5   :  { %vm2443_vm15 = vcmp.lt.f32.partialorder %v764_v32, 0.0004427343  ;;  %v2448_v45 = vmul.f32 %v2113_v16, %v762_v21  ;;  %v2450_v6 = vadd.f32 1.0, %v1006_v7  ;;  %v2452_v29 = vsub.f32 %v669_v2, %v685_v4  ;;  %v3051_v7 = vld [vmem:[#allocation42_spill] sm:$0xff]  ;;  %v3053_v32 = vld [vmem:[#allocation29_spill] sm:$0xff] }
 0x1b6   :  { %v1729_v46 = vpop.eup %1728  ;;  %v797_v43 = vmul.f32 -0.5, %v3050_v17  ;;  %v2455_v27 = vadd.f32 1.0, %v1054_v23  ;;  %v755_v28 = vand.u32 2147483647, %v3046_v38  ;;  %v1005_v50 = vmul.f32 %v989_v26, %v3041_v20 }
 0x1b7   :  { %v1731_v36 = vpop.eup %1730  ;;  %v1037_v42 = vadd.f32 %v989_v26, %v3041_v20  ;;  %v2460_v11 = vadd.f32 %v784_v19, %v704_v52  ;;  %v753_v16 = vadd.f32 1.0, %v752_v44  ;;  %1744 = vlog2.f32 %v2307_v10 }
 0x1b8   :  { %v1733_v33 = vpop.eup %1732  ;;  %v663_v24 = vmul.f32 1.442695, %v3051_v7  ;;  %v1120_v47 = vsub.f32 2.0, %v1104_v63  ;;  %v775_v0 = vsel %vm2429_vm14, %v772_v41, %v769_v58  ;;  %v674_v34 = vmax.f32 %v3052_v56, 0.0 }
 0x1b9   :  { %v690_v21 = vmul.f32 %v3053_v32, %v3052_v56  ;;  %v798_v2 = vadd.f32 1.0, %v797_v43  ;;  %v946_v4 = vmul.f32 %v1729_v46, %v2307_v10  ;;  %v945_v52 = vmul.f32 %v1731_v36, %v2313_v37 }
 0x1ba   :  { %v1735_v57 = vpop.eup %1734  ;;  %1746 = vpow2.f32 %v663_v24  ;;  %v1103_v23 = vmul.f32 %v1733_v33, %v2382_v15  ;;  %v760_v51 = vmul.f32 0.6931472, %v1727_v14  ;;  %vm2472_vm0 = vcmp.lt.f32.partialorder %v755_v28, 0.0004427343 }
 0x1bb   :  { %v1737_v40 = vpop.eup %1736  ;;  %v1053_v1 = vsub.f32 %v1037_v42, %v1005_v50  ;;  %1748 = vrcp.f32 %v2455_v27  ;;  %v754_v44 = vmul.f32 %v3046_v38, %v753_v16  ;;  %v800_v10 = vand.u32 2147483647, %v3050_v17 }
 0x1bc   :  { %v2476_v41 = vpop.eup %1738  ;;  %vm882_vm1 = vcmp.ge.f32.partialorder %v3052_v56, 0.0  ;;  %v1136_v19 = vmul.f32 %v1725_v59, %v1120_v47  ;;  %v2483_v15 = vadd.f32 %v775_v0, %v2405_v9  ;;  %v2485_v14 = vadd.f32 1.0, %v1005_v50  ;;  %v3058_v47 = vld [vmem:[#allocation20_spill] sm:$0xff] }
 0x1bd   :  { %v1741_v8 = vpop.eup %1740  ;;  %v2487_v63 = vsub.f32 %v674_v34, %v690_v21  ;;  %v799_v43 = vmul.f32 %v3050_v17, %v798_v2  ;;  %v962_v28 = vsub.f32 2.0, %v946_v4  ;;  %v961_v42 = vsub.f32 2.0, %v945_v52  ;;  %v3059_v4 = vld [vmem:[#allocation27_spill] sm:$0xff] }
 0x1be   :  { %v2489_v58 = vpop.eup %1742  ;;  %v2493_v38 = vadd.f32 1.0, %v2476_v41  ;;  %v1119_v16 = vsub.f32 2.0, %v1103_v23  ;;  %v766_v59 = vsel %vm2443_vm15, %v2448_v45, %v760_v51  ;;  %v2498_v9 = vadd.f32 1.0, %v1053_v1 }
 0x1bf   :  { %v948_v50 = vmul.f32 %v1737_v40, %v2403_v5  ;;  %v751_v7 = vmul.f32 0.6931472, %v1735_v57  ;;  %vm2501_vm2 = vcmp.lt.f32.partialorder %v800_v10, 0.0004427343  ;;  %vm881_vm3 = vcmp.ge.f32.partialorder %v3058_v47, 0.0 }
 0x1c0   :  { %v947_v0 = vmul.f32 %v1741_v8, %v2414_v18  ;;  %v1152_v34 = vmul.f32 %v1136_v19, %v2394_v53  ;;  %v898_v12 = vsel %vm882_vm1, 1.0, %v3050_v17  ;;  %v673_v45 = vmax.f32 %v3058_v47, 0.0 }
 0x1c1   :  { %v2513_v21 = vadd.f32 1.0, %v2489_v58  ;;  %v1745_v57 = vpop.eup %1744  ;;  %v978_v2 = vmul.f32 %v1729_v46, %v962_v28  ;;  %v689_v52 = vmul.f32 %v3059_v4, %v3058_v47  ;;  %v977_v23 = vmul.f32 %v1731_v36, %v961_v42 }
 0x1c2   :  { %1750 = vrcp.f32 %v2493_v38  ;;  %v1135_v51 = vmul.f32 %v1733_v33, %v1119_v16  ;;  %v897_v53 = vsel %vm881_vm3, 1.0, %v2276_v13  ;;  %v964_v56 = vsub.f32 2.0, %v948_v50  ;;  %v3060_v33 = vld [vmem:[#allocation21_spill] sm:$0xff] }
 0x1c3   :  { %1752 = vrcp.f32 %v2498_v9  ;;  %v2523_v1 = vadd.f32 %v766_v59, %v2436_v55  ;;  %v757_v46 = vsel %vm2472_vm0, %v754_v44, %v751_v7  ;;  %v963_v10 = vsub.f32 2.0, %v947_v0  ;;  %v3061_v55 = vld [vmem:[#allocation23_spill] sm:$0xff] }
 0x1c4   :  { %v2520_v17 = vpop.eup %1746  ;;  %1754 = vrcp.f32 %v2513_v21  ;;  %v796_v36 = vmul.f32 0.6931472, %v1745_v57  ;;  %v788_v19 = vmul.f32 -0.5, %v2276_v13  ;;  %vm884_vm4 = vcmp.ge.f32.partialorder %v3060_v33, 0.0 }
 0x1c5   :  { %v2531_v28 = vadd.f32 1.0, %v2520_v17  ;;  %v1749_v42 = vpop.eup %1748  ;;  %v1168_v16 = vsub.f32 1.0, %v1152_v34  ;;  %v994_v50 = vmul.f32 %v978_v2, %v898_v12  ;;  %v993_v47 = vmul.f32 %v977_v23, %v897_v53 }
 0x1c6   :  { %vm883_vm5 = vcmp.ge.f32.partialorder %v3061_v55, 0.0  ;;  %v2535_v26 = vmul.f32 %v1135_v51, %v2421_v48  ;;  %v2538_v44 = vadd.f32 %v757_v46, %v2452_v29  ;;  %v2540_v59 = vsub.f32 %v673_v45, %v689_v52 }
 0x1c7   :  { %v980_v7 = vmul.f32 %v1737_v40, %v964_v56  ;;  %v900_v0 = vsel %vm884_vm4, 1.0, %v2288_v22  ;;  %v979_v57 = vmul.f32 %v1741_v8, %v963_v10  ;;  %1756 = vrcp.f32 %v2531_v28 }
 0x1c8   :  { %v661_v34 = vmul.f32 1.442695, %v3062_v31  ;;  %v1102_v12 = vmul.f32 %v1749_v42, %v2455_v27  ;;  %v802_v2 = vsel %vm2501_vm2, %v799_v43, %v796_v36  ;;  %v789_v48 = vadd.f32 1.0, %v788_v19 }
 0x1c9   :  { %v899_v23 = vsel %vm883_vm5, 1.0, %v3037_v60  ;;  %v2550_v29 = vmul.f32 %v994_v50, %v3053_v32  ;;  %v1042_v40 = vadd.f32 %v994_v50, %v3053_v32  ;;  %v2554_v45 = vmul.f32 %v993_v47, %v3059_v4  ;;  %v3064_v50 = vld [vmem:[#allocation35_spill] sm:$0xff] }
 0x1ca   :  { %v1041_v8 = vadd.f32 %v993_v47, %v3059_v4  ;;  %v2558_v31 = vadd.f32 %v1168_v16, %v2460_v11  ;;  %1758 = vlog2.f32 %v2313_v37  ;;  %v791_v27 = vand.u32 2147483647, %v2276_v13  ;;  %v3065_v47 = vld [vmem:[#allocation28_spill] sm:$0xff] }
 0x1cb   :  { %v996_v43 = vmul.f32 %v980_v7, %v900_v0  ;;  %v1167_v52 = vsub.f32 1.0, %v2535_v26  ;;  %v2564_v51 = vadd.f32 %v802_v2, %v2487_v63  ;;  %v995_v53 = vmul.f32 %v979_v57, %v899_v23 }
 0x1cc   :  { %3063 = vst [vmem:[#allocation25_spill] sm:$0xff] %v2558_v31  ;;  %v1751_v24 = vpop.eup %1750  ;;  %1760 = vpow2.f32 %v661_v34  ;;  %v1118_v46 = vsub.f32 2.0, %v1102_v12  ;;  %v2567_v10 = vmul.f32 %v2276_v13, %v789_v48  ;;  %v676_v11 = vmax.f32 %v3060_v33, 0.0  ;;  %v3066_v34 = vld [vmem:[#allocation33_spill] sm:$0xff]  ;;  %v3067_v48 = vld [vmem:[#allocation30_spill] sm:$0xff] }
 0x1cd   :  { %v1753_v56 = vpop.eup %1752  ;;  %v950_v37 = vmul.f32 %v1751_v24, %v2493_v38  ;;  %v1058_v19 = vsub.f32 %v1042_v40, %v2550_v29  ;;  %v1057_v16 = vsub.f32 %v1041_v8, %v2554_v45  ;;  %v692_v63 = vmul.f32 %v3064_v50, %v3060_v33 }
 0x1ce   :  { %v1755_v36 = vpop.eup %1754  ;;  %vm886_vm6 = vcmp.ge.f32.partialorder %v3065_v47, 0.0  ;;  %v2577_v26 = vmul.f32 %v996_v43, %v3064_v50  ;;  %v1044_v13 = vadd.f32 %v996_v43, %v3064_v50  ;;  %v1101_v57 = vmul.f32 %v1753_v56, %v2498_v9 }
 0x1cf   :  { %v966_v7 = vsub.f32 2.0, %v950_v37  ;;  %v949_v0 = vmul.f32 %v1755_v36, %v2513_v21  ;;  %v2583_v12 = vmul.f32 %v995_v53, %v3066_v34  ;;  %v1043_v2 = vadd.f32 %v995_v53, %v3066_v34 }
 0x1d0   :  { %vm885_vm7 = vcmp.ge.f32.partialorder %v3067_v48, 0.0  ;;  %vm2587_vm8 = vcmp.lt.f32.partialorder %v791_v27, 0.0004427343  ;;  %1762 = vlog2.f32 %v2403_v5  ;;  %v815_v23 = vmul.f32 -0.5, %v2288_v22 }
 0x1d1   :  { %v982_v40 = vmul.f32 %v1751_v24, %v966_v7  ;;  %v965_v8 = vsub.f32 2.0, %v949_v0  ;;  %v1757_v43 = vpop.eup %1756  ;;  %v1134_v37 = vmul.f32 %v1749_v42, %v1118_v46  ;;  %v2593_v9 = vadd.f32 1.0, %v1058_v19 }
 0x1d2   :  { %v2595_v31 = vadd.f32 1.0, %v1057_v16  ;;  %v902_v53 = vsel %vm886_vm6, 1.0, %v2476_v41  ;;  %v1060_v27 = vsub.f32 %v1044_v13, %v2577_v26  ;;  %v901_v32 = vsel %vm885_vm7, 1.0, %v2489_v58 }
 0x1d3   :  { %v981_v50 = vmul.f32 %v1755_v36, %v965_v8  ;;  %v952_v5 = vmul.f32 %v1757_v43, %v2531_v28  ;;  %v1117_v4 = vsub.f32 2.0, %v1101_v57  ;;  %v818_v24 = vand.u32 2147483647, %v2288_v22 }
 0x1d4   :  { %1764 = vlog2.f32 %v2414_v18  ;;  %v1059_v42 = vsub.f32 %v1043_v2, %v2583_v12  ;;  %v1759_v46 = vpop.eup %1758  ;;  %v2607_v19 = vadd.f32 %v1167_v52, %v2483_v15  ;;  %v2609_v16 = vsub.f32 %v676_v11, %v692_v63 }
 0x1d5   :  { %v675_v13 = vmax.f32 %v3061_v55, 0.0  ;;  %v998_v7 = vmul.f32 %v982_v40, %v902_v53  ;;  %v1150_v36 = vmul.f32 %v1134_v37, %v2450_v6  ;;  %1766 = vrcp.f32 %v2593_v9  ;;  %v3073_v6 = vld [vmem:[#allocation38_spill] sm:$0xff] }
 0x1d6   :  { %3070 = vst [vmem:[#allocation47_spill] sm:$0xff] %v2607_v19  ;;  %v2612_v0 = vpop.eup %1760  ;;  %v816_v57 = vadd.f32 1.0, %v815_v23  ;;  %v997_v8 = vmul.f32 %v981_v50, %v901_v32  ;;  %1768 = vrcp.f32 %v2595_v31  ;;  %v2617_v18 = vadd.f32 1.0, %v1060_v27  ;;  %v3074_v50 = vld [vmem:[#allocation34_spill] sm:$0xff] }
 0x1d7   :  { %v806_v15 = vmul.f32 -0.5, %v3037_v60  ;;  %v968_v52 = vsub.f32 2.0, %v952_v5  ;;  %v1133_v11 = vmul.f32 %v1753_v56, %v1117_v4  ;;  %v787_v63 = vmul.f32 0.6931472, %v1759_v46  ;;  %v3075_v56 = vld [vmem:[#allocation37_spill] sm:$0xff] }
 0x1d8   :  { %vm2620_vm9 = vcmp.lt.f32.partialorder %v818_v24, 0.0004427343  ;;  %v2624_v40 = vadd.f32 1.0, %v1059_v42  ;;  %v2627_v37 = vmul.f32 %v998_v7, %v3073_v6  ;;  %v1046_v32 = vadd.f32 %v998_v7, %v3073_v6 }
 0x1d9   :  { %vm888_vm10 = vcmp.ge.f32.partialorder %v3074_v50, 0.0  ;;  %v2632_v23 = vadd.f32 1.0, %v2612_v0  ;;  %v1166_v53 = vsub.f32 1.0, %v1150_v36  ;;  %v691_v4 = vmul.f32 %v3066_v34, %v3061_v55 }
 0x1da   :  { %v2637_v27 = vmul.f32 %v997_v8, %v3075_v56  ;;  %v1045_v5 = vadd.f32 %v997_v8, %v3075_v56  ;;  %v1763_v24 = vpop.eup %1762  ;;  %1770 = vrcp.f32 %v2617_v18  ;;  %v807_v42 = vadd.f32 1.0, %v806_v15 }
 0x1db   :  { %v809_v46 = vand.u32 2147483647, %v3037_v60  ;;  %v984_v7 = vmul.f32 %v1757_v43, %v968_v52  ;;  %v1149_v19 = vmul.f32 %v1133_v11, %v2485_v14  ;;  %v793_v36 = vsel %vm2587_vm8, %v2567_v10, %v787_v63 }
 0x1dc   :  { %1772 = vrcp.f32 %v2624_v40  ;;  %v904_v55 = vsel %vm888_vm10, 1.0, %v2520_v17  ;;  %v678_v34 = vmax.f32 %v3065_v47, 0.0  ;;  %v694_v8 = vmul.f32 %v3073_v6, %v3065_v47 }
 0x1dd   :  { %v1062_v15 = vsub.f32 %v1046_v32, %v2627_v37  ;;  %1774 = vrcp.f32 %v2632_v23  ;;  %v814_v52 = vmul.f32 0.6931472, %v1763_v24  ;;  %v817_v14 = vmul.f32 %v2288_v22, %v816_v57 }
 0x1de   :  { %v1765_v43 = vpop.eup %1764  ;;  %v707_v11 = vsub.f32 %v675_v13, %v691_v4  ;;  %v1061_v10 = vsub.f32 %v1045_v5, %v2637_v27  ;;  %v2656_v33 = vadd.f32 %v1166_v53, %v2523_v1  ;;  %v808_v63 = vmul.f32 %v3037_v60, %v807_v42  ;;  %v3078_v5 = vld [vmem:[#allocation41_spill] sm:$0xff] }
 0x1df   :  { %vm2659_vm11 = vcmp.lt.f32.partialorder %v809_v46, 0.0004427343  ;;  %v1000_v47 = vmul.f32 %v984_v7, %v904_v55  ;;  %v1767_v32 = vpop.eup %1766  ;;  %v1165_v6 = vsub.f32 1.0, %v1149_v19  ;;  %v2664_v35 = vadd.f32 %v793_v36, %v2540_v59 }
 0x1e0   :  { %v677_v22 = vmax.f32 %v3067_v48, 0.0  ;;  %v693_v13 = vmul.f32 %v3075_v56, %v3067_v48  ;;  %v1769_v57 = vpop.eup %1768  ;;  %v805_v1 = vmul.f32 0.6931472, %v1765_v43  ;;  %v2669_v53 = vsub.f32 %v678_v34, %v694_v8 }
 0x1e1   :  { %1776 = vlog2.f32 %v2493_v38  ;;  %v2672_v60 = vadd.f32 1.0, %v1062_v15  ;;  %v820_v4 = vsel %vm2620_vm9, %v817_v14, %v814_v52  ;;  %v2676_v19 = vadd.f32 1.0, %v1061_v10  ;;  %v3079_v52 = vld [vmem:[#allocation36_spill] sm:$0xff] }
 0x1e2   :  { %v680_v59 = vmax.f32 %v3074_v50, 0.0  ;;  %v696_v24 = vmul.f32 %v3078_v5, %v3074_v50  ;;  %v1026_v48 = vadd.f32 1.0, %v2550_v29  ;;  %v1106_v42 = vmul.f32 %v1767_v32, %v2593_v9 }
 0x1e3   :  { %v2684_v34 = vmul.f32 %v1000_v47, %v3078_v5  ;;  %v1048_v38 = vadd.f32 %v1000_v47, %v3078_v5  ;;  %v2688_v46 = vadd.f32 %v1165_v6, %v2538_v44  ;;  %v1105_v2 = vmul.f32 %v1769_v57, %v2595_v31 }
 0x1e4   :  { %v2691_v7 = vsub.f32 %v677_v22, %v693_v13  ;;  %1778 = vlog2.f32 %v2513_v21  ;;  %v1771_v36 = vpop.eup %1770  ;;  %v2695_v50 = vadd.f32 %v820_v4, %v2609_v16  ;;  %v811_v29 = vsel %vm2659_vm11, %v808_v63, %v805_v1 }
 0x1e5   :  { %v833_v9 = vmul.f32 -0.5, %v2476_v41  ;;  %1780 = vrcp.f32 %v2672_v60  ;;  %v1025_v44 = vadd.f32 1.0, %v2554_v45  ;;  %v836_v31 = vand.u32 2147483647, %v2476_v41 }
 0x1e6   :  { %v1773_v55 = vpop.eup %1772  ;;  %1782 = vrcp.f32 %v2676_v19  ;;  %v2704_v6 = vsub.f32 %v680_v59, %v696_v24  ;;  %v1122_v8 = vsub.f32 2.0, %v1106_v42  ;;  %v824_v16 = vmul.f32 -0.5, %v2489_v58 }
 0x1e7   :  { %v1775_v21 = vpop.eup %1774  ;;  %1784 = vlog2.f32 %v2531_v28  ;;  %v1064_v54 = vsub.f32 %v1048_v38, %v2684_v34  ;;  %v1121_v15 = vsub.f32 2.0, %v1105_v2  ;;  %v851_v43 = vmul.f32 -0.5, %v2520_v17 }
 0x1e8   :  { %vm887_vm12 = vcmp.ge.f32.partialorder %v3079_v52, 0.0  ;;  %v951_v45 = vmul.f32 %v1775_v21, %v2632_v23  ;;  %v1108_v14 = vmul.f32 %v1771_v36, %v2617_v18  ;;  %v834_v10 = vadd.f32 1.0, %v833_v9 }
 0x1e9   :  { %v827_v63 = vand.u32 2147483647, %v2489_v58  ;;  %1786 = vlog2.f32 %v2632_v23  ;;  %v2715_v47 = vadd.f32 %v811_v29, %v707_v11  ;;  %v1107_v28 = vmul.f32 %v1773_v55, %v2624_v40 }
 0x1ea   :  { %vm2718_vm13 = vcmp.lt.f32.partialorder %v836_v31, 0.0004427343  ;;  %v967_v13 = vsub.f32 2.0, %v951_v45  ;;  %v1138_v4 = vmul.f32 %v1767_v32, %v1122_v8  ;;  %v825_v59 = vadd.f32 1.0, %v824_v16  ;;  %v3084_v45 = vld [vmem:[#allocation40_spill] sm:$0xff] }
 0x1eb   :  { %v1777_v1 = vpop.eup %1776  ;;  %v2722_v24 = vadd.f32 1.0, %v1064_v54  ;;  %v903_v18 = vsel %vm887_vm12, 1.0, %v2612_v0  ;;  %v1137_v42 = vmul.f32 %v1769_v57, %v1121_v15  ;;  %v1028_v38 = vadd.f32 1.0, %v2577_v26 }
 0x1ec   :  { %v852_v23 = vadd.f32 1.0, %v851_v43  ;;  %v983_v11 = vmul.f32 %v1775_v21, %v967_v13  ;;  %v1124_v2 = vsub.f32 2.0, %v1108_v14  ;;  %v1027_v40 = vadd.f32 1.0, %v2583_v12 }
 0x1ed   :  { %v835_v29 = vmul.f32 %v2476_v41, %v834_v10  ;;  %vm2728_vm14 = vcmp.lt.f32.partialorder %v827_v63, 0.0004427343  ;;  %v1123_v31 = vsub.f32 2.0, %v1107_v28  ;;  %v832_v8 = vmul.f32 0.6931472, %v1777_v1 }
 0x1ee   :  { %v1779_v32 = vpop.eup %1778  ;;  %v842_v16 = vmul.f32 -0.5, %v2612_v0  ;;  %v999_v54 = vmul.f32 %v983_v11, %v903_v18  ;;  %v1154_v15 = vmul.f32 %v1138_v4, %v1026_v48  ;;  %v826_v26 = vmul.f32 %v2489_v58, %v825_v59 }
 0x1ef   :  { %v1781_v57 = vpop.eup %1780  ;;  %v854_v21 = vand.u32 2147483647, %v2520_v17  ;;  %1788 = vrcp.f32 %v2722_v24  ;;  %v1153_v41 = vmul.f32 %v1137_v42, %v1025_v44  ;;  %v853_v43 = vmul.f32 %v2520_v17, %v852_v23 }
 0x1f0   :  { %v1783_v12 = vpop.eup %1782  ;;  %v2738_v14 = vmul.f32 %v999_v54, %v3084_v45  ;;  %v1047_v10 = vadd.f32 %v999_v54, %v3084_v45  ;;  %v1140_v28 = vmul.f32 %v1771_v36, %v1124_v2  ;;  %v823_v13 = vmul.f32 0.6931472, %v1779_v32 }
 0x1f1   :  { %v1785_v63 = vpop.eup %1784  ;;  %v679_v48 = vmax.f32 %v3079_v52, 0.0  ;;  %v695_v58 = vmul.f32 %v3084_v45, %v3079_v52  ;;  %v1139_v1 = vmul.f32 %v1773_v55, %v1123_v31  ;;  %v838_v4 = vsel %vm2718_vm13, %v835_v29, %v832_v8 }
 0x1f2   :  { %v843_v44 = vadd.f32 1.0, %v842_v16  ;;  %v1063_v17 = vsub.f32 %v1047_v10, %v2738_v14  ;;  %v1170_v18 = vsub.f32 1.0, %v1154_v15  ;;  %v1110_v42 = vmul.f32 %v1781_v57, %v2672_v60 }
 0x1f3   :  { %v1787_v59 = vpop.eup %1786  ;;  %v1109_v23 = vmul.f32 %v1783_v12, %v2676_v19  ;;  %v845_v36 = vand.u32 2147483647, %v2612_v0  ;;  %v1169_v11 = vsub.f32 1.0, %v1153_v41  ;;  %v850_v2 = vmul.f32 0.6931472, %v1785_v63 }
 0x1f4   :  { %vm2750_vm15 = vcmp.lt.f32.partialorder %v854_v21, 0.0004427343  ;;  %v1079_v55 = vadd.f32 1.0, %v1063_v17  ;;  %v1156_v52 = vmul.f32 %v1140_v28, %v1028_v38  ;;  %v2755_v22 = vadd.f32 %v838_v4, %v2669_v53 }
 0x1f5   :  { %v829_v29 = vsel %vm2728_vm14, %v826_v26, %v823_v13  ;;  %v711_v31 = vsub.f32 %v679_v48, %v695_v58  ;;  %v1155_v60 = vmul.f32 %v1139_v1, %v1027_v40  ;;  %v841_v8 = vmul.f32 0.6931472, %v1787_v59  ;;  %v3089_v48 = vld [vmem:[#allocation17_spill] sm:$0xff] }
 0x1f6   :  { %v844_v19 = vmul.f32 %v2612_v0, %v843_v44  ;;  %1790 = vrcp.f32 %v1079_v55  ;;  %v2761_v54 = vadd.f32 %v1170_v18, %v2564_v51  ;;  %v1126_v15 = vsub.f32 2.0, %v1110_v42  ;;  %v3090_v42 = vld [vmem:[#allocation19_spill] sm:$0xff] }
 0x1f7   :  { %v1125_v21 = vsub.f32 2.0, %v1109_v23  ;;  %vm2763_vm0 = vcmp.lt.f32.partialorder %v845_v36, 0.0004427343  ;;  %v2768_v9 = vadd.f32 %v1169_v11, %v2664_v35  ;;  %v2771_v40 = vadd.f32 %v829_v29, %v2691_v7 }
 0x1f8   :  { %v856_v0 = vsel %vm2750_vm15, %v853_v43, %v850_v2  ;;  %v1172_v63 = vsub.f32 1.0, %v1156_v52  ;;  %v1030_v28 = vadd.f32 1.0, %v2627_v37  ;;  %v1029_v13 = vadd.f32 1.0, %v2637_v27 }
 0x1f9   :  { %v2775_v26 = vpop.eup %1788  ;;  %v1171_v4 = vsub.f32 1.0, %v1155_v60  ;;  %v847_v7 = vsel %vm2763_vm0, %v844_v19, %v841_v8  ;;  %v1142_v17 = vmul.f32 %v1781_v57, %v1126_v15  ;;  %v1141_v59 = vmul.f32 %v1783_v12, %v1125_v21 }
 0x1fa   :  { %v2785_v37 = vadd.f32 %v856_v0, %v2704_v6  ;;  %v1112_v27 = vmul.f32 %v2775_v26, %v2722_v24  ;;  %v2791_v2 = vadd.f32 %v1172_v63, %v2695_v50  ;;  %v2799_v52 = vadd.f32 %v847_v7, %v711_v31 }
 0x1fb   :  { %v2797_v32 = vadd.f32 %v1171_v4, %v2715_v47  ;;  %v2801_v24 = vmul.f32 %v1142_v17, %v1030_v28  ;;  %v2803_v8 = vmul.f32 %v1141_v59, %v1029_v13  ;;  %vm1266_vm1 = vcmask 130112  }
 0x1fc   :  { %v1128_v15 = vsub.f32 2.0, %v1112_v27  ;;  %vm1331_vm2 = vcmask 1041409   ;;  %vm1333_vm3 = vcmask 1042434   ;;  %vm1335_vm4 = vcmask 1043459  }
 0x1fd   :  { %vm1337_vm5 = vcmask 1044484   ;;  %vm1339_vm6 = vcmask 1045509   ;;  %vm1341_vm7 = vcmask 1046534   ;;  %vm1343_vm8 = vcmask 1047559  }
 0x1fe   :  { %vm1346_vm9 = vcmask 130048  }
 0x237   :  { %v1608_v16 = vpop.f32.mrb[0].mxu1 }
 0x238   :  { %v502_v53 = vmul.f32 0.0010405828, %v1608_v16  ;;  %v437_v41 = vpop.f32.mrb[1].mxu1 }
 0x239   :  { %v500_v51 = vmul.f32 0.0010405828, %v437_v41  ;;  %v1609_v10 = vpop.f32.mrb[2].mxu1 }
 0x23a   :  { %v518_v58 = vsub.f32 %v502_v53, %v3089_v48  ;;  %v503_v1 = vmul.f32 0.0010405828, %v1609_v10  ;;  %v440_v35 = vpop.f32.mrb[3].mxu1 }
 0x23b   :  { %v516_v44 = vsub.f32 %v500_v51, %v2108_v61  ;;  %v501_v43 = vmul.f32 0.0010405828, %v440_v35  ;;  %v2794_v61 = vadd.f32 1.0, %v2684_v34 }
 0x23c   :  { %v534_v18 = vand.u32 2147483647, %v518_v58  ;;  %v519_v23 = vsub.f32 %v503_v1, %v3090_v42 }
 0x23d   :  { %v532_v36 = vand.u32 2147483647, %v516_v44  ;;  %v517_v11 = vsub.f32 %v501_v43, %v2125_v25  ;;  %v1791_v25 = vpop.eup %1790  ;;  %v3091_v43 = vld [vmem:[#allocation50_spill] sm:$0xff] }
 0x23e   :  { %v550_v57 = vmul.f32 5.0, %v534_v18  ;;  %v535_v12 = vand.u32 2147483647, %v519_v23  ;;  %v1111_v41 = vmul.f32 %v1791_v25, %v1079_v55  ;;  %v3092_v18 = vld [vmem:[#allocation48_spill] sm:$0xff] }
 0x23f   :  { %v548_v6 = vmul.f32 5.0, %v532_v36  ;;  %v533_v29 = vand.u32 2147483647, %v517_v11  ;;  %v1612_v60 = vpop.f32.mrb[4].mxu1 }
 0x240   :  { %v551_v50 = vmul.f32 5.0, %v535_v12  ;;  %v506_v19 = vmul.f32 0.0010405828, %v1612_v60  ;;  %v566_v16 = vadd.f32 1.0, %v550_v57  ;;  %v453_v34 = vpop.f32.mrb[5].mxu1  ;;  %v1127_v23 = vsub.f32 2.0, %v1111_v41 }
 0x241   :  { %v549_v21 = vmul.f32 5.0, %v533_v29  ;;  %v504_v38 = vmul.f32 0.0010405828, %v453_v34  ;;  %v1613_v53 = vpop.f32.mrb[6].mxu1  ;;  %v564_v47 = vadd.f32 1.0, %v548_v6  ;;  %v1031_v60 = vadd.f32 1.0, %v2738_v14 }
 0x242   :  { %v522_v31 = vsub.f32 %v506_v19, %v2167_v62  ;;  %v587_v0 = vmul.f32 %v2372_v39, %v566_v16  ;;  %v507_v51 = vmul.f32 0.0010405828, %v1613_v53  ;;  %v456_v10 = vpop.f32.mrb[7].mxu1  ;;  %v567_v63 = vadd.f32 1.0, %v551_v50 }
 0x243   :  { %v520_v28 = vsub.f32 %v504_v38, %v3041_v20  ;;  %v585_v13 = vmul.f32 %v2372_v39, %v564_v47  ;;  %v505_v48 = vmul.f32 0.0010405828, %v456_v10  ;;  %v565_v58 = vadd.f32 1.0, %v549_v21  ;;  %v3094_v38 = vld [vmem:[#allocation33_spill] sm:$0xff] }
 0x244   :  { %v538_v1 = vand.u32 2147483647, %v522_v31  ;;  %1354 = vadd.xlane.f32.xlu1 %v587_v0  ;;  %v523_v35 = vsub.f32 %v507_v51, %v2177_v30  ;;  %v588_v4 = vmul.f32 %v2372_v39, %v567_v63  ;;  %v1195_v55 = vmul.f32 %v2374_v3, %v587_v0  ;;  %v3093_v30 = vld [vmem:[#allocation49_spill] sm:$0xff] }
 0x245   :  { %v536_v62 = vand.u32 2147483647, %v520_v28  ;;  %1350 = vadd.xlane.f32.xlu0 %v585_v13  ;;  %v521_v7 = vsub.f32 %v505_v48, %v3036_v49  ;;  %v586_v44 = vmul.f32 %v2372_v39, %v565_v58  ;;  %v1193_v20 = vmul.f32 %v3091_v43, %v585_v13  ;;  %v3096_v13 = vld [vmem:[#allocation35_spill] sm:$0xff] }
 0x246   :  { %v554_v17 = vmul.f32 5.0, %v538_v1  ;;  %v539_v59 = vand.u32 2147483647, %v523_v35  ;;  %v1196_v42 = vmul.f32 %v3092_v18, %v588_v4  ;;  %v1144_v3 = vmul.f32 %v2775_v26, %v1128_v15  ;;  %v3095_v15 = vld [vmem:[#allocation27_spill] sm:$0xff]  ;;  %v3098_v35 = vld [vmem:[#allocation29_spill] sm:$0xff] }
 0x247   :  { %v552_v27 = vmul.f32 5.0, %v536_v62  ;;  %v537_v36 = vand.u32 2147483647, %v521_v7  ;;  %v1194_v11 = vmul.f32 %v3093_v30, %v586_v44  ;;  %v1616_v57 = vpop.f32.mrb[8].mxu1  ;;  %v1143_v21 = vmul.f32 %v1791_v25, %v1127_v23  ;;  %v3097_v48 = vld [vmem:[#allocation47_spill] sm:$0xff] }
 0x248   :  { %v555_v12 = vmul.f32 5.0, %v539_v59  ;;  %1356 = vadd.xlane.f32.xlu1 %v588_v4  ;;  %v510_v6 = vmul.f32 0.0010405828, %v1616_v57  ;;  %v469_v49 = vpop.f32.mrb[9].mxu1  ;;  %v570_v29 = vadd.f32 1.0, %v554_v17  ;;  %v3099_v17 = vld [vmem:[#allocation25_spill] sm:$0xff] }
 0x249   :  { %v553_v50 = vmul.f32 5.0, %v537_v36  ;;  %1213 = vadd.xlane.f32.xlu0 %v1195_v55  ;;  %v508_v19 = vmul.f32 0.0010405828, %v469_v49  ;;  %v1617_v16 = vpop.f32.mrb[10].mxu1  ;;  %v568_v34 = vadd.f32 1.0, %v552_v27  ;;  %v1159_v18 = vmul.f32 %v1143_v21, %v1031_v60 }
 0x24a   :  { %v526_v53 = vsub.f32 %v510_v6, %v3094_v38  ;;  %v571_v47 = vadd.f32 1.0, %v555_v12  ;;  %v511_v41 = vmul.f32 0.0010405828, %v1617_v16  ;;  %v591_v31 = vmul.f32 %v2372_v39, %v570_v29  ;;  %v472_v26 = vpop.f32.mrb[11].mxu1 }
 0x24b   :  { %v524_v0 = vsub.f32 %v508_v19, %v3095_v15  ;;  %v509_v51 = vmul.f32 0.0010405828, %v472_v26  ;;  %v569_v10 = vadd.f32 1.0, %v553_v50  ;;  %v2823_v63 = vmul.f32 %v2372_v39, %v568_v34  ;;  %v3100_v26 = vld [vmem:[#allocation38_spill] sm:$0xff] }
 0x24c   :  { %1215 = vadd.xlane.f32.xlu1 %v1196_v42  ;;  %v542_v14 = vand.u32 2147483647, %v526_v53  ;;  %v592_v28 = vmul.f32 %v2372_v39, %v571_v47  ;;  %v527_v25 = vsub.f32 %v511_v41, %v3096_v13  ;;  %v2828_v58 = vmul.f32 %v3097_v48, %v591_v31 }
 0x24d   :  { %1352 = vadd.xlane.f32.xlu0 %v586_v44  ;;  %v540_v1 = vand.u32 2147483647, %v524_v0  ;;  %v525_v4 = vsub.f32 %v509_v51, %v3098_v35  ;;  %v590_v55 = vmul.f32 %v2372_v39, %v569_v10  ;;  %v2834_v62 = vmul.f32 %v2688_v46, %v2823_v63 }
 0x24e   :  { %v558_v7 = vmul.f32 5.0, %v542_v14  ;;  %v543_v43 = vand.u32 2147483647, %v527_v25  ;;  %v1200_v59 = vmul.f32 %v3099_v17, %v592_v28  ;;  %v1173_v44 = vsub.f32 1.0, %v2803_v8 }
 0x24f   :  { %v556_v42 = vmul.f32 5.0, %v540_v1  ;;  %v541_v23 = vand.u32 2147483647, %v525_v4  ;;  %v1620_v27 = vpop.f32.mrb[12].mxu1  ;;  %v2838_v36 = vmul.f32 %v2656_v33, %v590_v55  ;;  %v1160_v46 = vmul.f32 %v1144_v3, %v2794_v61 }
 0x250   :  { %1211 = vadd.xlane.f32.xlu1 %v1194_v11  ;;  %v559_v30 = vmul.f32 5.0, %v543_v43  ;;  %v514_v57 = vmul.f32 0.0010405828, %v1620_v27  ;;  %v485_v12 = vpop.f32.mrb[13].mxu1  ;;  %v574_v6 = vadd.f32 1.0, %v558_v7  ;;  %v1175_v19 = vsub.f32 1.0, %v1159_v18 }
 0x251   :  { %1209 = vadd.xlane.f32.xlu0 %v1193_v20  ;;  %v557_v49 = vmul.f32 5.0, %v541_v23  ;;  %v512_v29 = vmul.f32 0.0010405828, %v485_v12  ;;  %v1621_v50 = vpop.f32.mrb[14].mxu1  ;;  %v572_v60 = vadd.f32 1.0, %v556_v42  ;;  %v1174_v48 = vsub.f32 1.0, %v2801_v24 }
 0x252   :  { %v530_v16 = vsub.f32 %v514_v57, %v3084_v45  ;;  %v515_v34 = vmul.f32 0.0010405828, %v1621_v50  ;;  %v488_v33 = vpop.f32.mrb[15].mxu1  ;;  %v575_v21 = vadd.f32 1.0, %v559_v30  ;;  %v595_v8 = vmul.f32 %v2372_v39, %v574_v6 }
 0x253   :  { %v528_v11 = vsub.f32 %v512_v29, %v3075_v56  ;;  %v513_v38 = vmul.f32 0.0010405828, %v488_v33  ;;  %v573_v53 = vadd.f32 1.0, %v557_v49  ;;  %v593_v47 = vmul.f32 %v2372_v39, %v572_v60 }
 0x254   :  { %1364 = vadd.xlane.f32.xlu1 %v592_v28  ;;  %v546_v61 = vand.u32 2147483647, %v530_v16  ;;  %v531_v20 = vsub.f32 %v515_v34, %v3078_v5  ;;  %v596_v3 = vmul.f32 %v2372_v39, %v575_v21  ;;  %v1203_v41 = vmul.f32 %v2797_v32, %v595_v8 }
 0x255   :  { %1362 = vadd.xlane.f32.xlu0 %v591_v31  ;;  %v544_v45 = vand.u32 2147483647, %v528_v11  ;;  %v529_v15 = vsub.f32 %v513_v38, %v3100_v26  ;;  %v594_v0 = vmul.f32 %v2372_v39, %v573_v53  ;;  %v1201_v56 = vmul.f32 %v2768_v9, %v593_v47 }
 0x256   :  { %v562_v51 = vmul.f32 5.0, %v546_v61  ;;  %v547_v10 = vand.u32 2147483647, %v531_v20  ;;  %v1204_v14 = vmul.f32 %v2791_v2, %v596_v3  ;;  %v1176_v28 = vsub.f32 1.0, %v1160_v46 }
 0x257   :  { %v560_v13 = vmul.f32 5.0, %v544_v45  ;;  %v545_v25 = vand.u32 2147483647, %v529_v15  ;;  %v1202_v5 = vmul.f32 %v2761_v54, %v594_v0  ;;  %v1191_v1 = vadd.f32 %v1175_v19, %v2799_v52 }
 0x258   :  { %1360 = vadd.xlane.f32.xlu1 %v590_v55  ;;  %v563_v32 = vmul.f32 5.0, %v547_v10  ;;  %v578_v31 = vadd.f32 1.0, %v562_v51  ;;  %v1189_v4 = vadd.f32 %v1173_v44, %v2771_v40  ;;  %v1192_v43 = vadd.f32 %v1176_v28, %v2785_v37 }
 0x259   :  { %1358 = vadd.xlane.f32.xlu0 %v2823_v63  ;;  %v561_v35 = vmul.f32 5.0, %v545_v25  ;;  %v576_v9 = vadd.f32 1.0, %v560_v13  ;;  %v1190_v24 = vadd.f32 %v1174_v48, %v2755_v22 }
 0x25a   :  { %v579_v7 = vadd.f32 1.0, %v563_v32  ;;  %v599_v2 = vmul.f32 %v2372_v39, %v578_v31 }
 0x25b   :  { %v577_v17 = vadd.f32 1.0, %v561_v35  ;;  %v597_v54 = vmul.f32 %v2372_v39, %v576_v9 }
 0x25c   :  { %1223 = vadd.xlane.f32.xlu1 %v1200_v59  ;;  %v600_v55 = vmul.f32 %v2372_v39, %v579_v7  ;;  %v1207_v52 = vmul.f32 %v1191_v1, %v599_v2  ;;  %v3102_v59 = vld [vmem:[#allocation32_spill] sm:$0xff] }
 0x25d   :  { %1221 = vadd.xlane.f32.xlu0 %v2828_v58  ;;  %v598_v63 = vmul.f32 %v2372_v39, %v577_v17  ;;  %v1205_v18 = vmul.f32 %v1189_v4, %v597_v54  ;;  %v3101_v58 = vld [vmem:[#allocation31_spill] sm:$0xff] }
 0x25e   :  { %v1208_v40 = vmul.f32 %v1192_v43, %v600_v55 }
 0x25f   :  { %v1206_v42 = vmul.f32 %v1190_v24, %v598_v63 }
 0x260   :  { %1219 = vadd.xlane.f32.xlu1 %v2838_v36 }
 0x261   :  { %1217 = vadd.xlane.f32.xlu0 %v2834_v62 }
 0x264   :  { %1372 = vadd.xlane.f32.xlu1 %v596_v3 }
 0x265   :  { %1370 = vadd.xlane.f32.xlu0 %v595_v8 }
 0x268   :  { %1368 = vadd.xlane.f32.xlu1 %v594_v0 }
 0x269   :  { %1366 = vadd.xlane.f32.xlu0 %v593_v47 }
 0x26c   :  { %1227 = vadd.xlane.f32.xlu1 %v1202_v5 }
 0x26d   :  { %1225 = vadd.xlane.f32.xlu0 %v1201_v56 }
 0x270   :  { %1380 = vadd.xlane.f32.xlu1 %v600_v55 }
 0x271   :  { %1378 = vadd.xlane.f32.xlu0 %v599_v2 }
 0x274   :  { %1376 = vadd.xlane.f32.xlu1 %v598_v63 }
 0x275   :  { %1374 = vadd.xlane.f32.xlu0 %v597_v54 }
 0x278   :  { %1231 = vadd.xlane.f32.xlu1 %v1204_v14 }
 0x279   :  { %1229 = vadd.xlane.f32.xlu0 %v1203_v41 }
 0x27c   :  { %1235 = vadd.xlane.f32.xlu1 %v1206_v42 }
 0x27d   :  { %1233 = vadd.xlane.f32.xlu0 %v1205_v18 }
 0x280   :  { %1239 = vadd.xlane.f32.xlu1 %v1208_v40 }
 0x281   :  { %1237 = vadd.xlane.f32.xlu0 %v1207_v52 }
 0x2d1   :  { %v1355_v39 = vpop.xlane.xlu1 %1354 }
 0x2d2   :  { %v1351_v22 = vpop.xlane.xlu0 %1350  ;;  %v1410_v62 = vrot.slane %v1355_v39, %v3101_v58 }
 0x2d3   :  { %v1401_v6 = vrot.slane %v1351_v22, %v3101_v58 }
 0x2d5   :  { %v1357_v37 = vpop.xlane.xlu1 %1356 }
 0x2d6   :  { %v1414_v23 = vrot.slane %v1357_v37, %v3102_v59  ;;  %v1214_v27 = vpop.xlane.xlu0 %1213 }
 0x2d7   :  { %v1271_v30 = vrot.slane %v1214_v27, %v3101_v58 }
 0x2d8   :  { %v1415_v36 = vsel %vm1266_vm1, %v1414_v23, %v1410_v62 }
 0x2d9   :  { %v1216_v44 = vpop.xlane.xlu1 %1215 }
 0x2da   :  { %v1275_v57 = vrot.slane %v1216_v44, %v3102_v59  ;;  %v1353_v12 = vpop.xlane.xlu0 %1352 }
 0x2db   :  { %v1405_v46 = vrot.slane %v1353_v12, %v3102_v59 }
 0x2dc   :  { %v1276_v49 = vsel %vm1266_vm1, %v1275_v57, %v1271_v30 }
 0x2dd   :  { %v1406_v29 = vsel %vm1266_vm1, %v1405_v46, %v1401_v6  ;;  %v1212_v50 = vpop.xlane.xlu1 %1211 }
 0x2de   :  { %v1470_v60 = vsel %vm1331_vm2, %v1415_v36, %v1406_v29  ;;  %v1265_v19 = vrot.slane %v1212_v50, %v3102_v59  ;;  %v1210_v16 = vpop.xlane.xlu0 %1209 }
 0x2df   :  { %v1260_v34 = vrot.slane %v1210_v16, %v3101_v58 }
 0x2e1   :  { %v1267_v33 = vsel %vm1266_vm1, %v1265_v19, %v1260_v34  ;;  %v1365_v21 = vpop.xlane.xlu1 %1364 }
 0x2e2   :  { %v1332_v8 = vsel %vm1331_vm2, %v1276_v49, %v1267_v33  ;;  %v1432_v11 = vrot.slane %v1365_v21, %v3102_v59  ;;  %v1363_v38 = vpop.xlane.xlu0 %1362 }
 0x2e3   :  { %v1428_v53 = vrot.slane %v1363_v38, %v3101_v58 }
 0x2e5   :  { %v1433_v47 = vsel %vm1266_vm1, %v1432_v11, %v1428_v53  ;;  %v1361_v61 = vpop.xlane.xlu1 %1360 }
 0x2e6   :  { %v1423_v20 = vrot.slane %v1361_v61, %v3102_v59  ;;  %v1359_v3 = vpop.xlane.xlu0 %1358 }
 0x2e7   :  { %v1419_v41 = vrot.slane %v1359_v3, %v3101_v58 }
 0x2e9   :  { %v1424_v45 = vsel %vm1266_vm1, %v1423_v20, %v1419_v41  ;;  %v1224_v26 = vpop.xlane.xlu1 %1223 }
 0x2ea   :  { %v1471_v15 = vsel %vm1333_vm3, %v1424_v45, %v1470_v60  ;;  %v1293_v0 = vrot.slane %v1224_v26, %v3102_v59  ;;  %v1222_v56 = vpop.xlane.xlu0 %1221 }
 0x2eb   :  { %v1289_v51 = vrot.slane %v1222_v56, %v3101_v58  ;;  %v1472_v10 = vsel %vm1335_vm4, %v1433_v47, %v1471_v15 }
 0x2ed   :  { %v1294_v14 = vsel %vm1266_vm1, %v1293_v0, %v1289_v51  ;;  %v1220_v28 = vpop.xlane.xlu1 %1219 }
 0x2ee   :  { %v1284_v13 = vrot.slane %v1220_v28, %v3102_v59  ;;  %v1218_v25 = vpop.xlane.xlu0 %1217 }
 0x2ef   :  { %v1280_v5 = vrot.slane %v1218_v25, %v3101_v58 }
 0x2f1   :  { %v1285_v48 = vsel %vm1266_vm1, %v1284_v13, %v1280_v5  ;;  %v1373_v32 = vpop.xlane.xlu1 %1372 }
 0x2f2   :  { %v1334_v31 = vsel %vm1333_vm3, %v1285_v48, %v1332_v8  ;;  %v1450_v1 = vrot.slane %v1373_v32, %v3102_v59  ;;  %v1371_v35 = vpop.xlane.xlu0 %1370 }
 0x2f3   :  { %v1446_v9 = vrot.slane %v1371_v35, %v3101_v58  ;;  %v1336_v4 = vsel %vm1335_vm4, %v1294_v14, %v1334_v31 }
 0x2f5   :  { %v1451_v7 = vsel %vm1266_vm1, %v1450_v1, %v1446_v9  ;;  %v1369_v2 = vpop.xlane.xlu1 %1368 }
 0x2f6   :  { %v1441_v43 = vrot.slane %v1369_v2, %v3102_v59  ;;  %v1367_v17 = vpop.xlane.xlu0 %1366 }
 0x2f7   :  { %v1437_v54 = vrot.slane %v1367_v17, %v3101_v58 }
 0x2f9   :  { %v1442_v24 = vsel %vm1266_vm1, %v1441_v43, %v1437_v54  ;;  %v1228_v55 = vpop.xlane.xlu1 %1227 }
 0x2fa   :  { %v1473_v52 = vsel %vm1337_vm5, %v1442_v24, %v1472_v10  ;;  %v1302_v63 = vrot.slane %v1228_v55, %v3102_v59  ;;  %v1226_v18 = vpop.xlane.xlu0 %1225 }
 0x2fb   :  { %v1298_v40 = vrot.slane %v1226_v18, %v3101_v58  ;;  %v1474_v42 = vsel %vm1339_vm6, %v1451_v7, %v1473_v52 }
 0x2fd   :  { %v1303_v39 = vsel %vm1266_vm1, %v1302_v63, %v1298_v40  ;;  %v1381_v22 = vpop.xlane.xlu1 %1380 }
 0x2fe   :  { %v1338_v37 = vsel %vm1337_vm5, %v1303_v39, %v1336_v4  ;;  %v1468_v62 = vrot.slane %v1381_v22, %v3102_v59  ;;  %v1379_v23 = vpop.xlane.xlu0 %1378 }
 0x2ff   :  { %v1464_v27 = vrot.slane %v1379_v23, %v3101_v58 }
 0x301   :  { %v1377_v36 = vpop.xlane.xlu1 %1376  ;;  %v1469_v44 = vsel %vm1266_vm1, %v1468_v62, %v1464_v27 }
 0x302   :  { %v1459_v30 = vrot.slane %v1377_v36, %v3102_v59  ;;  %v1375_v57 = vpop.xlane.xlu0 %1374 }
 0x303   :  { %v1455_v12 = vrot.slane %v1375_v57, %v3101_v58 }
 0x305   :  { %v1460_v6 = vsel %vm1266_vm1, %v1459_v30, %v1455_v12  ;;  %v1232_v46 = vpop.xlane.xlu1 %1231 }
 0x306   :  { %v1311_v49 = vrot.slane %v1232_v46, %v3102_v59  ;;  %v1230_v29 = vpop.xlane.xlu0 %1229  ;;  %v1475_v50 = vsel %vm1341_vm7, %v1460_v6, %v1474_v42 }
 0x307   :  { %v1307_v60 = vrot.slane %v1230_v29, %v3101_v58  ;;  %v1476_v19 = vsel %vm1343_vm8, %v1469_v44, %v1475_v50 }
 0x308   :  { %v1478_v16 = vsel %vm1346_vm9, %v1476_v19, 0.0 }
 0x309   :  { %v1312_v34 = vsel %vm1266_vm1, %v1311_v49, %v1307_v60  ;;  %v1236_v33 = vpop.xlane.xlu1 %1235  ;;  %1479 = vadd.xlane.f32.xlu0 %v1478_v16 }
 0x30a   :  { %v1320_v21 = vrot.slane %v1236_v33, %v3102_v59  ;;  %v1234_v8 = vpop.xlane.xlu0 %1233  ;;  %v1340_v11 = vsel %vm1339_vm6, %v1312_v34, %v1338_v37 }
 0x30b   :  { %v1316_v38 = vrot.slane %v1234_v8, %v3101_v58 }
 0x30d   :  { %v1321_v53 = vsel %vm1266_vm1, %v1320_v21, %v1316_v38  ;;  %v1240_v47 = vpop.xlane.xlu1 %1239 }
 0x30e   :  { %v1329_v61 = vrot.slane %v1240_v47, %v3102_v59  ;;  %v1238_v20 = vpop.xlane.xlu0 %1237  ;;  %v1342_v3 = vsel %vm1341_vm7, %v1321_v53, %v1340_v11 }
 0x30f   :  { %v1325_v41 = vrot.slane %v1238_v20, %v3101_v58 }
 0x311   :  { %v1330_v45 = vsel %vm1266_vm1, %v1329_v61, %v1325_v41 }
 0x312   :  { %v1344_v26 = vsel %vm1343_vm8, %v1330_v45, %v1342_v3 }
 0x313   :  { %v1347_v15 = vsel %vm1346_vm9, %v1344_v26, 0.0 }
 0x314   :  { %1348 = vadd.xlane.f32.xlu1 %v1347_v15 }
 0x396   :  { %v1480_v0 = vpop.xlane.xlu0 %1479 }
 0x397   :  { %1792 = vrcp.f32 %v1480_v0 }
 0x3a1   :  { %v1793_v56 = vpop.eup %1792  ;;  %v1349_v51 = vpop.xlane.xlu1 %1348 }
 0x3a2   :  { %v1482_v10 = vmul.f32 %v1793_v56, %v1349_v51 }
 0x3a4   :  { %1483 = vst [vmem:[#allocation10] sm:$0xff] %v1482_v10 }
 0x3a5   :  { %1893 = shalt.err (!%p1890_p8)
}
 0x3a6   :  { %s1894_s15 = scalar_lea.hbm %s2943_s4, 128 }
 0x3a7   :  { %p1895_p9 = scmp.ne.s32.totalorder %s2943_s4, %s1894_s15  ;;  %p1898_p10 = scmp.lt.u32.totalorder %s1894_s15, %s2943_s4 }
 0x3a9   :  { %p1900_p11 = pnand %p1898_p10, %p1895_p9 }
 0x3ab   :  { %1903 = shalt.err (!%p1900_p11)
}
 0x3ac   :  { %1493 = dma.vmem_to_hbm [thread:$0]  %s1491_s25, 128, %s2943_s4, [#allocation4]  }
 0x3ad   :  { %1910 = dma.done.wait [#allocation4], 128  }
 0x3ae   :  { %1911 = vsyncadd [#allocation4], 4294967168 }
 0x3af   :  { %1497 = vsyncpa [#allocation3], 1 }
 0x3b0   :  { %1498 = vsyncpa [#allocation6], 1 }
 0x3b1   :  { %1499 = vsyncpa [#allocation9], 1 }
 0x3b2   :  { %1500 = vsyncpa [#allocation4], 1 }

</bundles_post_ra>
